<compile_context>
chip_gen: v6e
topology: v6e:2x2x1
jax: 0.10.0
libtpu: 0.0.40
codegen_flags: <defaults>
</compile_context>

<pallas_src>
import numpy as np
import jax
import jax.numpy as jnp
from jax.experimental import pallas as pl
from jax.experimental.pallas import tpu as pltpu

SIZES = (1, 2, 3, 6)
EPS = 1e-5           # BatchNorm2d default eps
S2P = 128            # packed pooled-cell lane axis (1+4+9+36 = 50 -> pad to 128)
LANE = 128


# ---------------------------------------------------------------------------
# Host-side glue: pooling / bilinear matrices and packed table construction
# ---------------------------------------------------------------------------
def _adaptive_pool_matrix(in_size, out_size):
    # PyTorch AdaptiveAvgPool2d: window i = [floor(i*N/s), ceil((i+1)*N/s))
    P = np.zeros((out_size, in_size), dtype=np.float64)
    for i in range(out_size):
        start = (i * in_size) // out_size
        end = -(-((i + 1) * in_size) // out_size)
        P[i, start:end] = 1.0 / (end - start)
    return P


def _bilinear_matrix(out_size, in_size):
    # F.interpolate(mode='bilinear', align_corners=True), in_size -> out_size
    Bm = np.zeros((out_size, in_size), dtype=np.float64)
    if in_size == 1:
        Bm[:, 0] = 1.0
        return Bm
    scale = (in_size - 1) / (out_size - 1)
    for y in range(out_size):
        src = y * scale
        i0 = min(int(np.floor(src)), in_size - 1)
        i1 = min(i0 + 1, in_size - 1)
        frac = src - i0
        Bm[y, i0] += 1.0 - frac
        Bm[y, i1] += frac
    return Bm


def build_psp_tables(params, H, W, sizes=SIZES, compute_dtype=jnp.float32):
    """Build packed constant tables ONCE per parameter set (hoisted glue).

    params: list per stage of (conv_w (C_out,C_in), gamma, beta, run_mean, run_var).
    compute_dtype: dtype of the big streamed matmul operands (PT/BT); x is
    cast to it in the wrapper.  Folded conv weights A, bias Bm and mask M stay
    float32 for accuracy.
    """
    HW = H * W
    HWp = ((HW + LANE - 1) // LANE) * LANE      # lane-dense (pad sliced off later)
    n_stages = len(sizes)
    C_out, C_in = params[0][0].shape
    SC = n_stages * C_out
    cells = [s * s for s in sizes]
    offs = np.concatenate([[0], np.cumsum(cells)[:-1]]).astype(int)
    assert int(np.sum(cells)) <= S2P

    PT = np.zeros((HWp, S2P), np.float32)   # pooling matrices, packed along lanes
    BT = np.zeros((S2P, HWp), np.float32)   # bilinear upsample matrices, packed rows
    A = np.zeros((SC, C_in), np.float32)    # conv1x1 weights with folded BN scale
    Bm = np.zeros((SC, S2P), np.float32)    # folded BN shift, masked, lane-dense
    M = np.zeros((SC, S2P), np.float32)     # 0/1 stage-ownership mask

    for k, s in enumerate(sizes):
        o, n = int(offs[k]), int(cells[k])
        Ph = _adaptive_pool_matrix(H, s)
        Pw = _adaptive_pool_matrix(W, s)
        P2 = np.kron(Ph, Pw)                # (s*s, HW)
        Bh = _bilinear_matrix(H, s)
        Bw = _bilinear_matrix(W, s)
        B2 = np.kron(Bh, Bw)                # (HW, s*s)
        PT[:HW, o:o + n] = P2.T
        BT[o:o + n, :HW] = B2.T

        Wc, gamma, beta, mean, var = params[k]
        scale = gamma / np.sqrt(var + EPS)                  # fold eval-mode BN
        A[k * C_out:(k + 1) * C_out, :] = scale[:, None] * Wc
        Bm[k * C_out:(k + 1) * C_out, o:o + n] = (beta - scale * mean)[:, None]
        M[k * C_out:(k + 1) * C_out, o:o + n] = 1.0

    return dict(PT=jnp.asarray(PT, compute_dtype), BT=jnp.asarray(BT, compute_dtype),
                A=jnp.asarray(A), Bm=jnp.asarray(Bm), M=jnp.asarray(M),
                C_in=C_in, C_out=C_out, n_stages=n_stages,
                H=H, W=W, HW=HW, HWp=HWp,
                compute_dtype=jnp.dtype(compute_dtype))


# ---------------------------------------------------------------------------
# Pallas kernel: grid = (batch, SC tile, C_in reduction tile)
# ---------------------------------------------------------------------------
def _psp_kernel(x_ref, pt_ref, a_ref, bm_ref, m_ref, bt_ref, out_ref, y_acc):
    k = pl.program_id(2)

    @pl.when(k == 0)
    def _init():
        y_acc[...] = jnp.zeros_like(y_acc)

    # (c_tile, HWp) @ (HWp, S2P) -> pooled cells of all 4 stages for this slab
    pooled = jnp.dot(x_ref[0], pt_ref[...],
                     preferred_element_type=jnp.float32)          # (c_tile, S2P)
    pooled = pooled.astype(a_ref.dtype)
    # folded conv1x1 (+BN scale), accumulated over C_in slabs
    y_acc[...] += jnp.dot(a_ref[...], pooled,
                          preferred_element_type=jnp.float32)     # (sc_tile, S2P)

    @pl.when(k == pl.num_programs(2) - 1)
    def _finalize():
        # mask zeroes cross-stage / padded lanes; Bm carries the folded BN
        # bias only on each stage's own cells, so relu(y*M + Bm) is exact.
        z = jnp.maximum(y_acc[...] * m_ref[...] + bm_ref[...], 0.0)
        z = z.astype(bt_ref.dtype)
        out_ref[0] = jnp.dot(z, bt_ref[...],
                             preferred_element_type=jnp.float32
                             ).astype(out_ref.dtype)              # (sc_tile, HWp)


# ---------------------------------------------------------------------------
# Wrapper
# ---------------------------------------------------------------------------
def _pick_vmem_limit_bytes():
    # ~3/4 of physical VMEM, capped at 100 MiB: ~96 MiB on v5e/v6e, ~48 MiB on v7x.
    cap = 64 * 1024 * 1024
    try:
        cap = int(getattr(pltpu.get_tpu_info(), "vmem_capacity_bytes", cap))
    except Exception:
        pass
    return int(min(100 * 1024 * 1024, (cap * 3) // 4))


def _pick_c_tile(C_in, c_tile):
    # c_tile is the last dim of the A block and second-minor of the x block:
    # it must be a multiple of 128 (covers 8/16 sublane packing) or == C_in.
    if c_tile is None:
        c_tile = min(512, C_in)
    if c_tile >= C_in or C_in % c_tile != 0 or c_tile % 128 != 0:
        return C_in
    return c_tile


def psp_stage_priors(feats, tables, *, c_tile=None, sc_tile=None,
                     single_buffer_tables=True):
    """Run the Pallas kernel.  Returns the upsampled stage outputs
    (B, n_stages*C_out, H, W); the feats passthrough is NOT written here."""
    compute_dtype = tables["compute_dtype"]
    B, C_in, H, W = feats.shape
    assert C_in == tables["C_in"] and H == tables["H"] and W == tables["W"]
    HW, HWp = tables["HW"], tables["HWp"]
    SC = tables["n_stages"] * tables["C_out"]

    c_tile = _pick_c_tile(C_in, c_tile)
    if sc_tile is None:
        sc_tile = SC                      # v7x/B==1: pass sc_tile (mult of 128)
    assert SC % sc_tile == 0 and (sc_tile == SC or sc_tile % 128 == 0)
    n_k = C_in // c_tile
    n_sc = SC // sc_tile
    # TODO(synk): when n_sc > 1 the x slab is re-read per SC tile; caching the
    # pooled (C_in, S2P) result would remove that redundant HBM traffic.

    x_flat = jnp.asarray(feats, compute_dtype).reshape(B, C_in, HW)
    if HWp != HW:
        x_flat = jnp.pad(x_flat, ((0, 0), (0, 0), (0, HWp - HW)))

    def run(single_buffer_consts):
        def spec(shape, index_map, constant=False):
            if constant and single_buffer_consts:
                return pl.BlockSpec(shape, index_map, pipeline_mode=pl.Buffered(1))
            return pl.BlockSpec(shape, index_map)

        in_specs = [
            spec((1, c_tile, HWp), lambda b, j, k: (b, k, 0)),                  # x slab
            spec((HWp, S2P), lambda b, j, k: (0, 0), constant=True),            # PT
            spec((sc_tile, c_tile), lambda b, j, k: (j, k),
                 constant=(n_k == 1 and n_sc == 1)),                            # A
            spec((sc_tile, S2P), lambda b, j, k: (j, 0), constant=(n_sc == 1)), # Bm
            spec((sc_tile, S2P), lambda b, j, k: (j, 0), constant=(n_sc == 1)), # M
            spec((S2P, HWp), lambda b, j, k: (0, 0), constant=True),            # BT
        ]
        grid_spec = pltpu.PrefetchScalarGridSpec(
            num_scalar_prefetch=0,
            grid=(B, n_sc, n_k),
            in_specs=in_specs,
            out_specs=pl.BlockSpec((1, sc_tile, HWp), lambda b, j, k: (b, j, 0)),
            scratch_shapes=[pltpu.VMEM((sc_tile, S2P), jnp.float32)],
        )
        return pl.pallas_call(
            _psp_kernel,
            out_shape=jax.ShapeDtypeStruct((B, SC, HWp), jnp.float32),
            grid_spec=grid_spec,
            compiler_params=pltpu.CompilerParams(
                dimension_semantics=("parallel", "parallel", "arbitrary"),
                vmem_limit_bytes=_pick_vmem_limit_bytes()),
        )(x_flat, tables["PT"], tables["A"], tables["Bm"], tables["M"], tables["BT"])

    if single_buffer_tables:
        try:
            up = jax.block_until_ready(run(True))
        except Exception:
            # Fallback if this Pallas build rejects pipeline_mode=Buffered(1).
            up = run(False)
    else:
        up = run(False)

    up = jax.block_until_ready(up)
    return up[:, :, :HW].reshape(B, SC, H, W)


def psp_module_forward(feats, tables, **kwargs):
    """Full PSPModule.forward semantics: cat([feats] + upsampled stages, dim=1).
    The feats passthrough is concatenated lazily by XLA outside the kernel."""
    up = psp_stage_priors(feats, tables, **kwargs)
    return jnp.concatenate([jnp.asarray(feats, jnp.float32), up], axis=1)


# ---------------------------------------------------------------------------
# Pure numpy reference (direct PyTorch-semantics implementation)
# ---------------------------------------------------------------------------
def _reference_numpy(feats, params, sizes=SIZES):
    B, C_in, H, W = feats.shape
    priors = [feats.astype(np.float32)]
    for (Wc, gamma, beta, mean, var), s in zip(params, sizes):
        pooled = np.zeros((B, C_in, s, s), np.float32)
        for i in range(s):
            hs, he = (i * H) // s, -(-((i + 1) * H) // s)
            for j in range(s):
                ws, we = (j * W) // s, -(-((j + 1) * W) // s)
                pooled[:, :, i, j] = feats[:, :, hs:he, ws:we].mean(axis=(2, 3))
        y = np.einsum('oc,bcij->boij', Wc, pooled)
        y = (y - mean[None, :, None, None]) / np.sqrt(var[None, :, None, None] + EPS)
        y = y * gamma[None, :, None, None] + beta[None, :, None, None]
        z = np.maximum(y, 0.0)
        Bh = _bilinear_matrix(H, s)
        Bw = _bilinear_matrix(W, s)
        up = np.einsum('hi,boij,wj->bohw', Bh, z, Bw)
        priors.append(up.astype(np.float32))
    return np.concatenate(priors, axis=1)


if __name__ == "__main__":
    key = jax.random.PRNGKey(0)
    B, C_in, C_out, H, W = 2, 256, 8, 16, 16   # C_in=256 so the C_in reduction tiling is exercised

    k_feats, k_params = jax.random.split(key)
    feats = jax.random.normal(k_feats, (B, C_in, H, W), dtype=jnp.float32)

    params = []
    for i, s in enumerate(SIZES):
        ks = jax.random.split(jax.random.fold_in(k_params, i), 5)
        Wc = jax.random.normal(ks[0], (C_out, C_in)) * 0.2       # conv1x1, no bias
        gamma = jax.random.uniform(ks[1], (C_out,), minval=0.5, maxval=1.5)
        beta = jax.random.normal(ks[2], (C_out,)) * 0.1
        mean = jax.random.normal(ks[3], (C_out,)) * 0.1
        var = jax.random.uniform(ks[4], (C_out,), minval=0.5, maxval=1.5)
        params.append(tuple(np.asarray(t, np.float32)
                            for t in (Wc, gamma, beta, mean, var)))

    ref = _reference_numpy(np.asarray(feats), params)

    # f32 path, c_tile=128 -> 2 reduction steps over C_in (accumulator path).
    tables = build_psp_tables(params, H, W)                 # built once, reused
    out = jax.block_until_ready(psp_module_forward(feats, tables, c_tile=128))
    assert out.shape == (B, C_in + len(SIZES) * C_out, H, W)
    np.testing.assert_allclose(np.asarray(out), ref, rtol=2e-3, atol=2e-3)

    # bf16-streaming path (x/PT/BT in bf16, f32 accumulation) — looser tolerance.
    tables_bf16 = build_psp_tables(params, H, W, compute_dtype=jnp.bfloat16)
    out_bf16 = jax.block_until_ready(
        psp_module_forward(feats, tables_bf16, c_tile=128))
    np.testing.assert_allclose(np.asarray(out_bf16), ref, rtol=5e-2, atol=5e-2)

    print("KERNEL_OK")
</pallas_src>

<mosaic_0001>
module attributes {stable_mosaic.version = 11 : i64} {
  func.func @_psp_kernel(%arg0: i32, %arg1: i32, %arg2: i32, %arg3: memref<1x128x256xf32, #tpu.memory_space<vmem>>, %arg4: memref<256x128xf32, #tpu.memory_space<vmem>>, %arg5: memref<32x128xf32, #tpu.memory_space<vmem>>, %arg6: memref<32x128xf32, #tpu.memory_space<vmem>>, %arg7: memref<32x128xf32, #tpu.memory_space<vmem>>, %arg8: memref<128x256xf32, #tpu.memory_space<vmem>>, %arg9: memref<1x32x256xf32, #tpu.memory_space<vmem>>, %arg10: memref<32x128xf32, #tpu.memory_space<vmem>>) attributes {dimension_semantics = [#tpu.dimension_semantics<parallel>, #tpu.dimension_semantics<parallel>, #tpu.dimension_semantics<arbitrary>], iteration_bounds = array<i64: 2, 1, 2>, scalar_prefetch = 0 : i64, scratch_operands = 1 : i64, tpu.core_type = #tpu.core_type<tc>, window_params = [{transform_indices = @transform_0, window_bounds = array<i64: 1, 128, 256>}, {pipeline_mode = #tpu.pipeline_mode<synchronous>, transform_indices = @transform_1, window_bounds = array<i64: 256, 128>}, {transform_indices = @transform_2, window_bounds = array<i64: 32, 128>}, {pipeline_mode = #tpu.pipeline_mode<synchronous>, transform_indices = @transform_3, window_bounds = array<i64: 32, 128>}, {pipeline_mode = #tpu.pipeline_mode<synchronous>, transform_indices = @transform_4, window_bounds = array<i64: 32, 128>}, {pipeline_mode = #tpu.pipeline_mode<synchronous>, transform_indices = @transform_5, window_bounds = array<i64: 128, 256>}, {transform_indices = @transform_6, window_bounds = array<i64: 1, 32, 256>}]} {
    %c0_i32 = arith.constant 0 : i32
    %0 = arith.cmpi eq, %arg2, %c0_i32 : i32
    %1 = arith.extui %0 : i1 to i32
    %c0_i32_0 = arith.constant 0 : i32
    %2 = arith.cmpi ne, %1, %c0_i32_0 : i32
    scf.if %2 {
      %cst_13 = arith.constant 0.000000e+00 : f32
      %15 = vector.broadcast %cst_13 : f32 to vector<32x128xf32>
      %c0_14 = arith.constant 0 : index
      %c0_15 = arith.constant 0 : index
      %16 = vector.load %arg10[%c0_14, %c0_15] : memref<32x128xf32, #tpu.memory_space<vmem>>, vector<32x128xf32>
      tpu.vector_store %arg10[%c0_14, %c0_15], %15 {strides = array<i32>} : memref<32x128xf32, #tpu.memory_space<vmem>>, vector<32x128xf32>,
    } else {
    }
    %c0 = arith.constant 0 : index
    %c0_1 = arith.constant 0 : index
    %c0_2 = arith.constant 0 : index
    %3 = vector.load %arg3[%c0, %c0_1, %c0_2] : memref<1x128x256xf32, #tpu.memory_space<vmem>>, vector<1x128x256xf32>
    %4 = vector.shape_cast %3 : vector<1x128x256xf32> to vector<128x256xf32>
    %c0_3 = arith.constant 0 : index
    %c0_4 = arith.constant 0 : index
    %5 = vector.load %arg4[%c0_3, %c0_4] : memref<256x128xf32, #tpu.memory_space<vmem>>, vector<256x128xf32>
    %cst = arith.constant dense<0.000000e+00> : vector<128x128xf32>
    %6 = tpu.matmul %4, %5, %cst {dimension_numbers = #tpu.dot_dimension_numbers<[1], [0], [0], [1], [0, 0, 1, 1], [], []>} : vector<128x256xf32>, vector<256x128xf32>, vector<128x128xf32> -> vector<128x128xf32>
    %c0_5 = arith.constant 0 : index
    %c0_6 = arith.constant 0 : index
    %7 = vector.load %arg10[%c0_5, %c0_6] : memref<32x128xf32, #tpu.memory_space<vmem>>, vector<32x128xf32>
    %c0_7 = arith.constant 0 : index
    %c0_8 = arith.constant 0 : index
    %8 = vector.load %arg5[%c0_7, %c0_8] : memref<32x128xf32, #tpu.memory_space<vmem>>, vector<32x128xf32>
    %cst_9 = arith.constant dense<0.000000e+00> : vector<32x128xf32>
    %9 = tpu.matmul %8, %6, %cst_9 {dimension_numbers = #tpu.dot_dimension_numbers<[1], [0], [0], [1], [0, 0, 1, 1], [], []>} : vector<32x128xf32>, vector<128x128xf32>, vector<32x128xf32> -> vector<32x128xf32>
    %10 = arith.addf %7, %9 : vector<32x128xf32>
    %c0_10 = arith.constant 0 : index
    %c0_11 = arith.constant 0 : index
    %11 = vector.load %arg10[%c0_10, %c0_11] : memref<32x128xf32, #tpu.memory_space<vmem>>, vector<32x128xf32>
    tpu.vector_store %arg10[%c0_10, %c0_11], %10 {strides = array<i32>} : memref<32x128xf32, #tpu.memory_space<vmem>>, vector<32x128xf32>,
    %c1_i32 = arith.constant 1 : i32
    %12 = arith.cmpi eq, %arg2, %c1_i32 : i32
    %13 = arith.extui %12 : i1 to i32
    %c0_i32_12 = arith.constant 0 : i32
    %14 = arith.cmpi ne, %13, %c0_i32_12 : i32
    scf.if %14 {
      %c0_13 = arith.constant 0 : index
      %c0_14 = arith.constant 0 : index
      %15 = vector.load %arg10[%c0_13, %c0_14] : memref<32x128xf32, #tpu.memory_space<vmem>>, vector<32x128xf32>
      %c0_15 = arith.constant 0 : index
      %c0_16 = arith.constant 0 : index
      %16 = vector.load %arg7[%c0_15, %c0_16] : memref<32x128xf32, #tpu.memory_space<vmem>>, vector<32x128xf32>
      %17 = arith.mulf %15, %16 : vector<32x128xf32>
      %c0_17 = arith.constant 0 : index
      %c0_18 = arith.constant 0 : index
      %18 = vector.load %arg6[%c0_17, %c0_18] : memref<32x128xf32, #tpu.memory_space<vmem>>, vector<32x128xf32>
      %19 = arith.addf %17, %18 : vector<32x128xf32>
      %cst_19 = arith.constant 0.000000e+00 : f32
      %20 = vector.broadcast %cst_19 : f32 to vector<32x128xf32>
      %21 = arith.maximumf %19, %20 : vector<32x128xf32>
      %c0_20 = arith.constant 0 : index
      %c0_21 = arith.constant 0 : index
      %22 = vector.load %arg8[%c0_20, %c0_21] : memref<128x256xf32, #tpu.memory_space<vmem>>, vector<128x256xf32>
      %cst_22 = arith.constant dense<0.000000e+00> : vector<32x256xf32>
      %23 = tpu.matmul %21, %22, %cst_22 {dimension_numbers = #tpu.dot_dimension_numbers<[1], [0], [0], [1], [0, 0, 1, 1], [], []>} : vector<32x128xf32>, vector<128x256xf32>, vector<32x256xf32> -> vector<32x256xf32>
      %c0_23 = arith.constant 0 : index
      %c0_24 = arith.constant 0 : index
      %c0_25 = arith.constant 0 : index
      %24 = vector.load %arg9[%c0_23, %c0_24, %c0_25] : memref<1x32x256xf32, #tpu.memory_space<vmem>>, vector<1x32x256xf32>
      %25 = vector.shape_cast %24 : vector<1x32x256xf32> to vector<32x256xf32>
      %26 = vector.shape_cast %23 : vector<32x256xf32> to vector<1x32x256xf32>
      tpu.vector_store %arg9[%c0_23, %c0_24, %c0_25], %26 {strides = array<i32>} : memref<1x32x256xf32, #tpu.memory_space<vmem>>, vector<1x32x256xf32>,
    } else {
    }
    return
  }
  func.func @transform_0(%arg0: i32, %arg1: i32, %arg2: i32) -> (i32, i32, i32) {
    %c0_i32 = arith.constant 0 : i32
    %c0_i32_0 = arith.constant 0 : i32
    return %arg0, %arg2, %c0_i32 : i32, i32, i32
  }
  func.func @transform_1(%arg0: i32, %arg1: i32, %arg2: i32) -> (i32, i32) {
    %c0_i32 = arith.constant 0 : i32
    %c0_i32_0 = arith.constant 0 : i32
    %c0_i32_1 = arith.constant 0 : i32
    return %c0_i32, %c0_i32_0 : i32, i32
  }
  func.func @transform_2(%arg0: i32, %arg1: i32, %arg2: i32) -> (i32, i32) {
    %c0_i32 = arith.constant 0 : i32
    return %arg1, %arg2 : i32, i32
  }
  func.func @transform_3(%arg0: i32, %arg1: i32, %arg2: i32) -> (i32, i32) {
    %c0_i32 = arith.constant 0 : i32
    %c0_i32_0 = arith.constant 0 : i32
    return %arg1, %c0_i32 : i32, i32
  }
  func.func @transform_4(%arg0: i32, %arg1: i32, %arg2: i32) -> (i32, i32) {
    %c0_i32 = arith.constant 0 : i32
    %c0_i32_0 = arith.constant 0 : i32
    return %arg1, %c0_i32 : i32, i32
  }
  func.func @transform_5(%arg0: i32, %arg1: i32, %arg2: i32) -> (i32, i32) {
    %c0_i32 = arith.constant 0 : i32
    %c0_i32_0 = arith.constant 0 : i32
    %c0_i32_1 = arith.constant 0 : i32
    return %c0_i32, %c0_i32_0 : i32, i32
  }
  func.func @transform_6(%arg0: i32, %arg1: i32, %arg2: i32) -> (i32, i32, i32) {
    %c0_i32 = arith.constant 0 : i32
    %c0_i32_0 = arith.constant 0 : i32
    return %arg0, %arg1, %c0_i32 : i32, i32, i32
  }
}

module attributes {stable_mosaic.version = 11 : i64} {
  func.func @_psp_kernel(%arg0: i32, %arg1: i32, %arg2: i32, %arg3: memref<1x128x256xf32, #tpu.memory_space<vmem>>, %arg4: memref<256x128xf32, #tpu.memory_space<vmem>>, %arg5: memref<32x128xf32, #tpu.memory_space<vmem>>, %arg6: memref<32x128xf32, #tpu.memory_space<vmem>>, %arg7: memref<32x128xf32, #tpu.memory_space<vmem>>, %arg8: memref<128x256xf32, #tpu.memory_space<vmem>>, %arg9: memref<1x32x256xf32, #tpu.memory_space<vmem>>, %arg10: memref<32x128xf32, #tpu.memory_space<vmem>>) attributes {dimension_semantics = [#tpu.dimension_semantics<parallel>, #tpu.dimension_semantics<parallel>, #tpu.dimension_semantics<arbitrary>], iteration_bounds = array<i64: 2, 1, 2>, scalar_prefetch = 0 : i64, scratch_operands = 1 : i64, tpu.core_type = #tpu.core_type<tc>, window_params = [{transform_indices = @transform_0, window_bounds = array<i64: 1, 128, 256>}, {pipeline_mode = #tpu.pipeline_mode<synchronous>, transform_indices = @transform_1, window_bounds = array<i64: 256, 128>}, {transform_indices = @transform_2, window_bounds = array<i64: 32, 128>}, {transform_indices = @transform_3, window_bounds = array<i64: 32, 128>}, {transform_indices = @transform_4, window_bounds = array<i64: 32, 128>}, {pipeline_mode = #tpu.pipeline_mode<synchronous>, transform_indices = @transform_5, window_bounds = array<i64: 128, 256>}, {transform_indices = @transform_6, window_bounds = array<i64: 1, 32, 256>}]} {
    %c0_i32 = arith.constant 0 : i32
    %0 = arith.cmpi eq, %arg2, %c0_i32 : i32
    %1 = arith.extui %0 : i1 to i32
    %c0_i32_0 = arith.constant 0 : i32
    %2 = arith.cmpi ne, %1, %c0_i32_0 : i32
    scf.if %2 {
      %cst_13 = arith.constant 0.000000e+00 : f32
      %15 = vector.broadcast %cst_13 : f32 to vector<32x128xf32>
      %c0_14 = arith.constant 0 : index
      %c0_15 = arith.constant 0 : index
      %16 = vector.load %arg10[%c0_14, %c0_15] : memref<32x128xf32, #tpu.memory_space<vmem>>, vector<32x128xf32>
      tpu.vector_store %arg10[%c0_14, %c0_15], %15 {strides = array<i32>} : memref<32x128xf32, #tpu.memory_space<vmem>>, vector<32x128xf32>,
    } else {
    }
    %c0 = arith.constant 0 : index
    %c0_1 = arith.constant 0 : index
    %c0_2 = arith.constant 0 : index
    %3 = vector.load %arg3[%c0, %c0_1, %c0_2] : memref<1x128x256xf32, #tpu.memory_space<vmem>>, vector<1x128x256xf32>
    %4 = vector.shape_cast %3 : vector<1x128x256xf32> to vector<128x256xf32>
    %c0_3 = arith.constant 0 : index
    %c0_4 = arith.constant 0 : index
    %5 = vector.load %arg4[%c0_3, %c0_4] : memref<256x128xf32, #tpu.memory_space<vmem>>, vector<256x128xf32>
    %cst = arith.constant dense<0.000000e+00> : vector<128x128xf32>
    %6 = tpu.matmul %4, %5, %cst {dimension_numbers = #tpu.dot_dimension_numbers<[1], [0], [0], [1], [0, 0, 1, 1], [], []>} : vector<128x256xf32>, vector<256x128xf32>, vector<128x128xf32> -> vector<128x128xf32>
    %c0_5 = arith.constant 0 : index
    %c0_6 = arith.constant 0 : index
    %7 = vector.load %arg10[%c0_5, %c0_6] : memref<32x128xf32, #tpu.memory_space<vmem>>, vector<32x128xf32>
    %c0_7 = arith.constant 0 : index
    %c0_8 = arith.constant 0 : index
    %8 = vector.load %arg5[%c0_7, %c0_8] : memref<32x128xf32, #tpu.memory_space<vmem>>, vector<32x128xf32>
    %cst_9 = arith.constant dense<0.000000e+00> : vector<32x128xf32>
    %9 = tpu.matmul %8, %6, %cst_9 {dimension_numbers = #tpu.dot_dimension_numbers<[1], [0], [0], [1], [0, 0, 1, 1], [], []>} : vector<32x128xf32>, vector<128x128xf32>, vector<32x128xf32> -> vector<32x128xf32>
    %10 = arith.addf %7, %9 : vector<32x128xf32>
    %c0_10 = arith.constant 0 : index
    %c0_11 = arith.constant 0 : index
    %11 = vector.load %arg10[%c0_10, %c0_11] : memref<32x128xf32, #tpu.memory_space<vmem>>, vector<32x128xf32>
    tpu.vector_store %arg10[%c0_10, %c0_11], %10 {strides = array<i32>} : memref<32x128xf32, #tpu.memory_space<vmem>>, vector<32x128xf32>,
    %c1_i32 = arith.constant 1 : i32
    %12 = arith.cmpi eq, %arg2, %c1_i32 : i32
    %13 = arith.extui %12 : i1 to i32
    %c0_i32_12 = arith.constant 0 : i32
    %14 = arith.cmpi ne, %13, %c0_i32_12 : i32
    scf.if %14 {
      %c0_13 = arith.constant 0 : index
      %c0_14 = arith.constant 0 : index
      %15 = vector.load %arg10[%c0_13, %c0_14] : memref<32x128xf32, #tpu.memory_space<vmem>>, vector<32x128xf32>
      %c0_15 = arith.constant 0 : index
      %c0_16 = arith.constant 0 : index
      %16 = vector.load %arg7[%c0_15, %c0_16] : memref<32x128xf32, #tpu.memory_space<vmem>>, vector<32x128xf32>
      %17 = arith.mulf %15, %16 : vector<32x128xf32>
      %c0_17 = arith.constant 0 : index
      %c0_18 = arith.constant 0 : index
      %18 = vector.load %arg6[%c0_17, %c0_18] : memref<32x128xf32, #tpu.memory_space<vmem>>, vector<32x128xf32>
      %19 = arith.addf %17, %18 : vector<32x128xf32>
      %cst_19 = arith.constant 0.000000e+00 : f32
      %20 = vector.broadcast %cst_19 : f32 to vector<32x128xf32>
      %21 = arith.maximumf %19, %20 : vector<32x128xf32>
      %c0_20 = arith.constant 0 : index
      %c0_21 = arith.constant 0 : index
      %22 = vector.load %arg8[%c0_20, %c0_21] : memref<128x256xf32, #tpu.memory_space<vmem>>, vector<128x256xf32>
      %cst_22 = arith.constant dense<0.000000e+00> : vector<32x256xf32>
      %23 = tpu.matmul %21, %22, %cst_22 {dimension_numbers = #tpu.dot_dimension_numbers<[1], [0], [0], [1], [0, 0, 1, 1], [], []>} : vector<32x128xf32>, vector<128x256xf32>, vector<32x256xf32> -> vector<32x256xf32>
      %c0_23 = arith.constant 0 : index
      %c0_24 = arith.constant 0 : index
      %c0_25 = arith.constant 0 : index
      %24 = vector.load %arg9[%c0_23, %c0_24, %c0_25] : memref<1x32x256xf32, #tpu.memory_space<vmem>>, vector<1x32x256xf32>
      %25 = vector.shape_cast %24 : vector<1x32x256xf32> to vector<32x256xf32>
      %26 = vector.shape_cast %23 : vector<32x256xf32> to vector<1x32x256xf32>
      tpu.vector_store %arg9[%c0_23, %c0_24, %c0_25], %26 {strides = array<i32>} : memref<1x32x256xf32, #tpu.memory_space<vmem>>, vector<1x32x256xf32>,
    } else {
    }
    return
  }
  func.func @transform_0(%arg0: i32, %arg1: i32, %arg2: i32) -> (i32, i32, i32) {
    %c0_i32 = arith.constant 0 : i32
    %c0_i32_0 = arith.constant 0 : i32
    return %arg0, %arg2, %c0_i32 : i32, i32, i32
  }
  func.func @transform_1(%arg0: i32, %arg1: i32, %arg2: i32) -> (i32, i32) {
    %c0_i32 = arith.constant 0 : i32
    %c0_i32_0 = arith.constant 0 : i32
    %c0_i32_1 = arith.constant 0 : i32
    return %c0_i32, %c0_i32_0 : i32, i32
  }
  func.func @transform_2(%arg0: i32, %arg1: i32, %arg2: i32) -> (i32, i32) {
    %c0_i32 = arith.constant 0 : i32
    return %arg1, %arg2 : i32, i32
  }
  func.func @transform_3(%arg0: i32, %arg1: i32, %arg2: i32) -> (i32, i32) {
    %c0_i32 = arith.constant 0 : i32
    %c0_i32_0 = arith.constant 0 : i32
    return %arg1, %c0_i32 : i32, i32
  }
  func.func @transform_4(%arg0: i32, %arg1: i32, %arg2: i32) -> (i32, i32) {
    %c0_i32 = arith.constant 0 : i32
    %c0_i32_0 = arith.constant 0 : i32
    return %arg1, %c0_i32 : i32, i32
  }
  func.func @transform_5(%arg0: i32, %arg1: i32, %arg2: i32) -> (i32, i32) {
    %c0_i32 = arith.constant 0 : i32
    %c0_i32_0 = arith.constant 0 : i32
    %c0_i32_1 = arith.constant 0 : i32
    return %c0_i32, %c0_i32_0 : i32, i32
  }
  func.func @transform_6(%arg0: i32, %arg1: i32, %arg2: i32) -> (i32, i32, i32) {
    %c0_i32 = arith.constant 0 : i32
    %c0_i32_0 = arith.constant 0 : i32
    return %arg0, %arg1, %c0_i32 : i32, i32, i32
  }
}

</mosaic_0001>

<bundles_post_ra>
// kernel: tpu_custom_call.1
= control target key start
LH: loop header
LB: loop body
LE: loop exit
PB: predicated region body
PF: predicated region fallthrough
CT: control target
= control target key end

     0   :  { %s2243_s0 = inlined_call_operand.hbm [shape: f32[2,256,256], index: 0, kind: input, shape index: {}]   ;;  %s2244_s1 = inlined_call_operand.hbm [shape: f32[256,128], index: 1, kind: input, shape index: {}]   ;;  %s2245_s2 = inlined_call_operand.hbm [shape: f32[32,256], index: 2, kind: input, shape index: {}]   ;;  %s2246_s3 = inlined_call_operand.hbm [shape: f32[32,128], index: 3, kind: input, shape index: {}]   ;;  %s2247_s4 = inlined_call_operand.hbm [shape: f32[32,128], index: 4, kind: input, shape index: {}]   ;;  %s2248_s5 = inlined_call_operand.hbm [shape: f32[128,256], index: 5, kind: input, shape index: {}]   ;;  %s2249_s6 = inlined_call_operand.hbm [shape: f32[2,32,256], index: 6, kind: output, shape index: {}]  }
   0x1   :  { %2275 = sst [smem:[#allocation33_spill]] %s2244_s1 }
   0x2   :  { %2276 = sst [smem:[#allocation34_spill]] %s2247_s4 }
   0x3   :  { %2277 = sst [smem:[#allocation35_spill]] %s2249_s6 }
   0x4   :  { %11 = vsyncpa [#allocation4], 0 }
   0x5   :  { %13 = vsyncpa [#allocation4 + $0x1], 0 }
   0x6   :  { %14 = vsyncpa [#allocation7], 0 }
   0x7   :  { %15 = vsyncpa [#allocation11], 0 }
   0x8   :  { %16 = vsyncpa [#allocation5], 0 }
   0x9   :  { %18 = vsyncpa [#allocation5 + $0x1], 0  ;;  %s1819_s21 = smov 0   ;;  %s1821_s22 = smov 0  }
   0xa   :  { %s1823_s23 = smov 0   ;;  %s1825_s24 = smov 0  }
   0xb   :  { %s1827_s25 = smov 0   ;;  %s1829_s26 = smov 0  }
   0xc   :  { %s1831_s27 = smov 0   ;;  %s1833_s28 = smov 0  }
   0xd   :  { %s1835_s29 = smov 0   ;;  %s1837_s30 = smov 0  }
   0xe   :  { %s1839_s7 = smov 0   ;;  %s1841_s8 = smov 0  }
   0xf   :  { %s1843_s9 = smov 0   ;;  %s1845_s10 = smov 0  }
  0x10 LB: > { %2278 = sst [smem:[#allocation20_spill]] %s1715_s21  ;;  %s1888_s11 = sadd.s32 4294967295, %s1767_s10   ;;  %s1767_s10 = sphi %s1845_s10, %s24_s10   ;;  %s1763_s9 = sphi %s1843_s9, %s2347_s9   ;;  %s1759_s8 = sphi %s1841_s8, %s2346_s8   ;;  %s1755_s7 = sphi %s1839_s7, %s2345_s7   ;;  %s1751_s30 = sphi %s1837_s30, %s2344_s30   ;;  %s1747_s29 = sphi %s1835_s29, %s2343_s29   ;;  %s1743_s28 = sphi %s1833_s28, %s2342_s28   ;;  %s1739_s27 = sphi %s1831_s27, %s2341_s27   ;;  %s1735_s26 = sphi %s1829_s26, %s2340_s26   ;;  %s1731_s25 = sphi %s1827_s25, %s2339_s25   ;;  %s1727_s24 = sphi %s1825_s24, %s2338_s24   ;;  %s1723_s23 = sphi %s1823_s23, %s2337_s23   ;;  %s1719_s22 = sphi %s1821_s22, %s2336_s22   ;;  %s1715_s21 = sphi %s1819_s21, %s2332_s21  }
  0x11   : > { %2279 = sst [smem:[#allocation21_spill]] %s1719_s22  ;;  %s1066_s12 = sadd.s32 4294967294, %s1767_s10  }
  0x12   : > { %2280 = sst [smem:[#allocation22_spill]] %s1743_s28  ;;  %p2273_p0 = scmp.eq.s32.totalorder %s1888_s11, 0 }
  0x13   : > { %2281 = sst [smem:[#allocation23_spill]] %s1751_s30  ;;  %p114_p1 = scmp.ne.s32.totalorder %s1731_s25, %s1727_s24 }
  0x14   : > { %2282 = sst [smem:[#allocation24_spill]] %s1755_s7  ;;  %p212_p2 = scmp.ne.s32.totalorder %s1723_s23, %s1719_s22 }
  0x15   : > { %2283 = sst [smem:[#allocation25_spill]] %s1888_s11  ;;  %p213_p3 = scmp.eq.s32.totalorder %s1888_s11, 3 }
  0x16   : > { %p1898_p4 = por %p114_p1, %p2273_p0  ;;  %p218_p5 = scmp.ne.s32.totalorder %s1719_s22, %s1715_s21 }
  0x17   : > { %p1904_p6 = por %p213_p3, %p212_p2  ;;  %p219_p7 = scmp.eq.s32.totalorder %s1066_s12, 3 }
  0x18   : > { %s2284_s13 = scalar_select %p1898_p4, 1, 0 }
  0x19   : > { %s2286_s14 = scalar_select %p1904_p6, 1, 0 }
  0x1a   : > { %2285 = sst [smem:[#allocation26_spill]] %s2284_s13  ;;  %p1067_p8 = scmp.ge.s32.totalorder %s1767_s10, 1 }
  0x1b   : > { %2287 = sst [smem:[#allocation27_spill]] %s2286_s14  ;;  %p226_p9 = scmp.lt.s32.totalorder %s1767_s10, 5 }
  0x1c   : > { %p1910_p10 = por %p219_p7, %p218_p5  ;;  %s1769_s17 = smov [#allocation6]  }
  0x1d   : > { %p1914_p11 = pnand %p1067_p8, %p226_p9  ;;  %s238_s18 = sshll.u32 %s1769_s17, 4  ;;  %s239_s18 = int_to_ptr.vmem [resolvable:$true] %s238_s18 }
  0x1e   : > { %s2288_s15 = scalar_select %p1910_p10, 1, 0 }
  0x1f   : > { %s2290_s16 = scalar_select %p1914_p11, 1, 0 }
  0x20   : > { %2289 = sst [smem:[#allocation28_spill]] %s2288_s15  ;;  %p1289_p12 = pneg %p1914_p11 }
  0x21   : > { %2291 = sst [smem:[#allocation29_spill]] %s2290_s16  ;;  %s1770_s20 = smov [#allocation10]  }
  0x22   : > { %p1922_p13 = pnand %p1289_p12, %p2273_p0  ;;  %s270_s24 = sshll.u32 %s1770_s20, 4  ;;  %s271_s24 = int_to_ptr.vmem [resolvable:$true] %s270_s24 }
  0x23   : > { %s1458_s12 = scalar_lea.vmem %s239_s18, 4096  ;;  %p1466_p7 = scmp.lt.s32.totalorder %s239_s18, %s239_s18 }
  0x24   : > { %p2259_p1 = pneg %p1922_p13  ;;  %p1459_p2 = scmp.ne.s32.totalorder %s239_s18, %s1458_s12 }
  0x25   : > { %p1467_p8 = scmp.lt.s32.totalorder %s1458_s12, %s1458_s12 }
  0x26   : > { %p1461_p3 = pnand %p1459_p2, %p2259_p1 }
  0x27   : > { %p1468_p9 = por %p1467_p8, %p1466_p7 }
  0x28   : > { %p1462_p5 = pneg %p1461_p3 }
  0x2a   : > { %p1469_p12 = pnand %p1468_p9, %p1462_p5 }
  0x2c   : > { %1472 = shalt.err (!%p1469_p12)
}
  0x2d   : > { %s2255_s17 = smov 128   ;;  %s2257_s15 = smov 8  }
  0x2e   : > { %s2293_s1 = sld [smem:[#allocation33_spill]]  ;;  %s1484_s6 = scalar_lea.vmem %s271_s24, 512 }
  0x2f   : > { %p1485_p2 = scmp.ne.s32.totalorder %s271_s24, %s1484_s6  ;;  %p1492_p5 = scmp.lt.s32.totalorder %s271_s24, %s271_s24 }
  0x30   : > { %p1493_p8 = scmp.lt.s32.totalorder %s1484_s6, %s1484_s6 }
  0x31   : > { %p1487_p3 = pnand %p1485_p2, %p2259_p1 }
  0x32   : > { %p1494_p9 = por %p1493_p8, %p1492_p5 }
  0x33   : > { %p1488_p7 = pneg %p1487_p3 }
  0x34   : > { %1292 = dma.hbm_to_vmem [thread:$0]  (!%p1922_p13), %s2293_s1, 4096, %s239_s18, [#allocation7], %s2255_s17, %s2255_s17, %s2257_s15  }
  0x35   : > { %p1495_p12 = pnand %p1494_p9, %p1488_p7 }
  0x37   : > { %1498 = shalt.err (!%p1495_p12)
}
  0x38   : > { %s2294_s4 = sld [smem:[#allocation34_spill]]  ;;  %s36_s6 = sadd.s32 1, %s1759_s8 }
  0x39   : > { %p37_p2 = scmp.ge.s32.totalorder %s36_s6, 2  ;;  %s43_s21 = sadd.s32 1, %s1763_s9 }
  0x3a   : > { %s52_s18 = sadd.s32 1, %s1747_s29  ;;  %p59_p3 = scmp.ne.s32.totalorder %s1747_s29, %s1743_s28 }
  0x3b   : > { %s2349_s6 = smov (%p37_p2, %s36_s6), 0  ;;  %s2351_s21 = smov (!%p37_p2, %s43_s21), %s1763_s9 }
  0x3c   : > { %2295 = sst [smem:[#allocation30_spill]] %s2349_s6  ;;  %s1960_s14 = ssub.s32 %s1759_s8, %s2349_s6 }
  0x3d   : > { %p2260_p7 = scmp.eq.s32.totalorder %s1767_s10, 0  ;;  %p45_p5 = scmp.ge.s32.totalorder %s2351_s21, 2 }
  0x3e   : > { %1298 = dma.hbm_to_vmem [thread:$0]  (!%p1922_p13), %s2294_s4, 512, %s271_s24, [#allocation11], %s2255_s17, %s2255_s17, %s2257_s15  }
  0x3f   : > { %p65_p8 = scmp.ne.s32.totalorder %s1743_s28, %s1739_s27  ;;  %p1967_p9 = por %p2260_p7, %p59_p3 }
  0x40   : > { %s2353_s21 = smov (%p45_p5, %s2351_s21), 0  ;;  %s202_s12 = sadd.s32 1, %s1723_s23 }
  0x41   : > { %2297 = sst [smem:[#allocation31_spill]] %s2353_s21  ;;  %p1976_p2 = por %p2273_p0, %p65_p8 }
  0x42   : > { %s47_s17 = ssub.s32 %s1763_s9, %s2353_s21  ;;  %p2274_p7 = scmp.lt.s32.totalorder %s1767_s10, 4 }
  0x43   : > { %s2298_s20 = scalar_select %p1976_p2, 1, 0 }
  0x44   : > { %s49_s15 = sor.u32 %s1960_s14, %s47_s17  ;;  %p200_p1 = scmp.eq.s32.totalorder %s47_s17, 0 }
  0x45   : > { %2299 = sst [smem:[#allocation32_spill]] %s2298_s20  ;;  %p50_p3 = scmp.eq.s32.totalorder %s49_s15, 0 }
  0x46   : > { %s1985_s27 = scalar_select %p200_p1, %s1723_s23, %s202_s12  }
  0x47   : > { %s1988_s1 = scalar_select %p50_p3, %s1747_s29, %s52_s18  }
  0x48   : > { %s297_s4 = sand.u32 1, %s1767_s10   ;;  %s299_s6 = sand.u32 1, %s1747_s29  }
  0x49   : > { %s1073_s7 = sshll.u32 %s299_s6, 8  ;;  %s1095_s30 = sshll.u32 %s1759_s8, 5 }
  0x4a   : > { %s1076_s22 = sshll.u32 %s1763_s9, 6  ;;  %s301_s28 = scalar_lea.vmem [#allocation3], %s1073_s7 }
  0x4b   : > { %s308_s13 = sadd.s32 %s1095_s30, %s1076_s22  ;;  %s311_s20 = sshll.u32 %s301_s28, 4  ;;  %s312_s20 = int_to_ptr.vmem [resolvable:$true] %s311_s20 }
  0x4c   : > { %s1077_s11 = sshll.u32 %s308_s13, 7  ;;  %p2002_p1 = pnand %p2274_p7, %p1967_p9 }
  0x4d   : > { %s310_s16 = scalar_lea.hbm %s2243_s0, %s1077_s11  ;;  %s1773_s18 = smov [#allocation9]  }
  0x4e   : > { %s254_s6 = sshll.u32 %s1773_s18, 4  ;;  %s2006_s12 = scalar_lea.sflag [#allocation4], %s297_s4  ;;  %s255_s6 = int_to_ptr.vmem [resolvable:$true] %s254_s6 }
  0x4f   : > { %p1501_p5 = pneg %p2002_p1  ;;  %s1512_s22 = scalar_lea.vmem %s312_s20, 4096 }
  0x50   : > { %p1513_p8 = scmp.ne.s32.totalorder %s312_s20, %s1512_s22  ;;  %s1774_s28 = smov [#allocation3]  }
  0x51   : > { %s1517_s30 = sshll.u32 %s1774_s28, 4  ;;  %s1518_s30 = int_to_ptr.vmem [resolvable:$false] %s1517_s30 }
  0x52   : > { %p1515_p3 = pnand %p1513_p8, %p1501_p5  ;;  %s1519_s7 = scalar_lea.vmem %s1518_s30, 8192 }
  0x53   : > { %p1520_p12 = scmp.lt.s32.totalorder %s312_s20, %s1518_s30  ;;  %p1521_p9 = scmp.lt.s32.totalorder %s1519_s7, %s1512_s22 }
  0x54   : > { %p1516_p0 = pneg %p1515_p3 }
  0x55   : > { %p1522_p7 = por %p1521_p9, %p1520_p12 }
  0x57   : > { %p1523_p10 = pnand %p1522_p7, %p1516_p0 }
  0x59   : > { %1526 = shalt.err (!%p1523_p10)
}
  0x5a   : > { %s1775_s11 = smov 256   ;;  %s1776_s4 = smov 16  }
  0x5b   : > { %1305 = dma.hbm_to_vmem [thread:$0]  (!%p2002_p1), %s310_s16, 4096, %s312_s20, %s2006_s12, %s1775_s11, %s1775_s11, %s1776_s4  }
  0x5c   : > { %s1777_s13 = smov [#allocation12]   ;;  %s1538_s24 = scalar_lea.vmem %s255_s6, 512 }
  0x5d   : > { %s283_s21 = sshll.u32 %s1777_s13, 4  ;;  %p1539_p5 = scmp.ne.s32.totalorder %s255_s6, %s1538_s24  ;;  %s284_s21 = int_to_ptr.vmem [resolvable:$true] %s283_s21 }
  0x5e   : > { %p2301_p8 = pneg %p1922_p13  ;;  %p1546_p0 = scmp.lt.s32.totalorder %s255_s6, %s255_s6 }
  0x5f   : > { %p1547_p10 = scmp.lt.s32.totalorder %s1538_s24, %s1538_s24 }
  0x60   : > { %p1541_p3 = pnand %p1539_p5, %p2301_p8 }
  0x61   : > { %p1548_p7 = por %p1547_p10, %p1546_p0 }
  0x62   : > { %p1542_p12 = pneg %p1541_p3 }
  0x64   : > { %p1549_p9 = pnand %p1548_p7, %p1542_p12 }
  0x66   : > { %1552 = shalt.err (!%p1549_p9)
}
  0x67   : > { %s2302_s17 = smov 8   ;;  %s2303_s15 = smov 128  }
  0x68   : > { %1295 = dma.hbm_to_vmem [thread:$0]  (!%p1922_p13), %s2246_s3, 512, %s255_s6, [#allocation7], %s2303_s15, %s2303_s15, %s2302_s17  }
  0x69   : > { %s1564_s18 = scalar_lea.vmem %s284_s21, 4096  ;;  %p2304_p5 = pmov %p2301_p8 }
  0x6a   : > { %p1565_p1 = scmp.ne.s32.totalorder %s284_s21, %s1564_s18  ;;  %p1572_p0 = scmp.lt.s32.totalorder %s284_s21, %s284_s21 }
  0x6b   : > { %p1573_p12 = scmp.lt.s32.totalorder %s1564_s18, %s1564_s18 }
  0x6c   : > { %p1567_p8 = pnand %p1565_p1, %p2304_p5 }
  0x6d   : > { %p1574_p10 = por %p1573_p12, %p1572_p0 }
  0x6e   : > { %p1568_p3 = pneg %p1567_p8 }
  0x70   : > { %p1575_p7 = pnand %p1574_p10, %p1568_p3 }
  0x72   : > { %1578 = shalt.err (!%p1575_p7)
}
  0x73   : > { %1301 = dma.hbm_to_vmem [thread:$0]  (!%p1922_p13), %s2248_s5, 4096, %s284_s21, [#allocation11], %s1775_s11, %s1775_s11, %s1776_s4  }
  0x74   : > { %s1079_s6 = sshll.u32 %s1759_s8, 7  ;;  %s101_s30 = sadd.s32 1, %s1735_s26 }
  0x75   : > { %p108_p9 = scmp.ne.s32.totalorder %s1735_s26, %s1731_s25  ;;  %p2305_p1 = scmp.eq.s32.totalorder %s1960_s14, 0 }
  0x76   : > { %p2306_p5 = scmp.eq.s32.totalorder %s1767_s10, 0  ;;  %s323_s7 = sand.u32 1, %s1735_s26  }
  0x77   : > { %s2043_s19 = scalar_select %p2305_p1, %s1735_s26, %s101_s30  }
  0x78   : > { %p110_p8 = por %p108_p9, %p2306_p5  ;;  %s1078_s13 = sshll.u32 %s323_s7, 5 }
  0x79   : > { %s333_s20 = scalar_lea.hbm %s2245_s2, %s1079_s6  ;;  %p2307_p3 = scmp.lt.s32.totalorder %s1767_s10, 4 }
  0x7a   : > { %s325_s4 = scalar_lea.vmem [#allocation8], %s1078_s13  ;;  %s1778_s22 = smov [#allocation8]  }
  0x7b   : > { %p2053_p0 = pnand %p2307_p3, %p110_p8  ;;  %s334_s21 = sshll.u32 %s325_s4, 4  ;;  %s335_s21 = int_to_ptr.vmem [resolvable:$true] %s334_s21 }
  0x7c   : > { %s1592_s14 = scalar_lea.vmem %s335_s21, 512  ;;  %s1597_s28 = sshll.u32 %s1778_s22, 4  ;;  %s1598_s28 = int_to_ptr.vmem [resolvable:$false] %s1597_s28 }
  0x7d   : > { %p1581_p13 = pneg %p2053_p0  ;;  %p1593_p12 = scmp.ne.s32.totalorder %s335_s21, %s1592_s14 }
  0x7e   : > { %s1599_s30 = scalar_lea.vmem %s1598_s28, 1024  ;;  %p1600_p9 = scmp.lt.s32.totalorder %s335_s21, %s1598_s28 }
  0x7f   : > { %p1595_p10 = pnand %p1593_p12, %p1581_p13  ;;  %p1601_p1 = scmp.lt.s32.totalorder %s1599_s30, %s1592_s14 }
  0x81   : > { %p1596_p7 = pneg %p1595_p10  ;;  %p1602_p5 = por %p1601_p1, %p1600_p9 }
  0x83   : > { %p1603_p8 = pnand %p1602_p5, %p1596_p7 }
  0x85   : > { %1606 = shalt.err (!%p1603_p8)
}
  0x86   : > { %1308 = dma.hbm_to_vmem [thread:$0]  (!%p2053_p0), %s333_s20, 512, %s335_s21, %s2006_s12, %s1775_s11, %s2303_s15, %s2302_s17  }
  0x87   : > { %346 = sbr.rel (%p1914_p11) target bundleno = 959 (0x3bf), region = 44  ;;  %s2310_s7 = sld [smem:[#allocation25_spill]] (!%p1914_p11) }
  0x88   : > { %s2311_s13 = sld [smem:[#allocation22_spill]] (!%p1914_p11) }
  0x8d   : > { %s348_s16 = sand.u32 1, %s2310_s7  }
  0x8e   : > { %s350_s4 = sand.u32 1, %s2311_s13   ;;  %s349_s14 = scalar_lea.sflag [#allocation4], %s348_s16 }
  0x8f   : > { %s1081_s22 = sshll.u32 %s350_s4, 8 }
  0x90   : > { %s2069_s28 = scalar_lea.vmem [#allocation3], %s1081_s22 }
  0x91   : > { %1690 = dma.done.wait (%p1976_p2), %s349_s14, 4096  }
  0x92   : > { %1692 = vsyncadd (%p1976_p2), %s349_s14, 4294963200  ;;  %p2313_p3 = scmp.eq.s32.totalorder %s2310_s7, 0 }
  0x94   : > { %1694 = dma.done.wait (%p2313_p3), [#allocation7], 4096   ;;  %p2314_p0 = pmov %p2313_p3 }
  0x95   : > { %s363_s11 = sand.u32 1, %s1731_s25  }
  0x96   : > { %1696 = vsyncadd (%p2314_p0), [#allocation7], 4294963200  ;;  %s1083_s17 = sshll.u32 %s363_s11, 5 }
  0x97   : > { %s2080_s15 = scalar_lea.vmem [#allocation8], %s1083_s17 }
  0x98   : > { %1698 = dma.done.wait (%p1898_p4), %s349_s14, 512  }
  0x99   : > { %1700 = vsyncadd (%p1898_p4), %s349_s14, 4294966784  ;;  %p2316_p11 = pmov %p2314_p0 }
  0x9a   : > { %p2317_p2 = pmov %p2314_p0 }
  0x9b   : > { %1702 = dma.done.wait (%p2316_p11), [#allocation7], 512  }
  0x9c   : > { %1704 = vsyncadd (%p2317_p2), [#allocation7], 4294966784  ;;  %p2318_p13 = pmov %p2314_p0 }
  0x9d   : > { %p2319_p12 = pmov %p2314_p0 }
  0x9e   : > { %1706 = dma.done.wait (%p2318_p13), [#allocation11], 4608  }
  0x9f   : > { %1708 = vsyncadd (%p2319_p12), [#allocation11], 4294962688  ;;  %s2320_s20 = sld [smem:[#allocation21_spill]] }
  0xa0   : > { %s2321_s6 = sld [smem:[#allocation23_spill]] }
  0xa5   : > { %s408_s18 = sand.u32 1, %s2320_s20  }
  0xa6   : > { %s1087_s21 = sshll.u32 %s408_s18, 6  ;;  %p1088_p4 = scmp.ne.s32.totalorder %s2321_s6, 0 }
  0xa7   : > { %s2097_s30 = scalar_lea.vmem [#allocation13], %s1087_s21 }
  0xa8   : > { %419 = sbr.rel (%p1088_p4) target bundleno = 176 (0xb0), region = 72 }
  0xad   : > { %v1779_v0 = vmov 0.0  }
  0xae   : > { %420 = vst [vmem:[#allocation2 + $0x10] sm:$0xff] %v1779_v0  ;;  %421 = vst [vmem:[#allocation2] sm:$0xff] %v1779_v0 }
  0xaf   : > { %422 = vst [vmem:[#allocation2 + $0x18] sm:$0xff] %v1779_v0  ;;  %423 = vst [vmem:[#allocation2 + $0x8] sm:$0xff] %v1779_v0 }
  0xb0 PF: > { %v487_v1 = vld [vmem:[#allocation6 + $0xf8] sm:$0xff]  ;;  %v486_v3 = vld [vmem:[#allocation6 + $0xf0] sm:$0xff]  ;;  %v485_v5 = vld [vmem:[#allocation6 + $0xe8] sm:$0xff]  ;;  %s2322_s7 = sld [smem:[#allocation23_spill]] }
  0xb1   : > { %v471_v2 = vld [vmem:[#allocation6 + $0x78] sm:$0xff]  ;;  %1097 = vmatprep.subr.mxu0 %v487_v1  ;;  %v470_v4 = vld [vmem:[#allocation6 + $0x70] sm:$0xff]  ;;  %v469_v6 = vld [vmem:[#allocation6 + $0x68] sm:$0xff] }
  0xb2   : > { %1098 = vmatpush3.msra.mxu0 %v471_v2  ;;  %v484_v7 = vld [vmem:[#allocation6 + $0xe0] sm:$0xff]  ;;  %v483_v9 = vld [vmem:[#allocation6 + $0xd8] sm:$0xff]  ;;  %v482_v11 = vld [vmem:[#allocation6 + $0xd0] sm:$0xff] }
  0xb3   : > { %1099 = vmatprep.subr.mxu0 %v486_v3  ;;  %v468_v8 = vld [vmem:[#allocation6 + $0x60] sm:$0xff]  ;;  %v467_v10 = vld [vmem:[#allocation6 + $0x58] sm:$0xff]  ;;  %v466_v12 = vld [vmem:[#allocation6 + $0x50] sm:$0xff] }
  0xb4   : > { %1100 = vmatpush3.msra.mxu0 %v470_v4  ;;  %v481_v13 = vld [vmem:[#allocation6 + $0xc8] sm:$0xff]  ;;  %v480_v16 = vld [vmem:[#allocation6 + $0xc0] sm:$0xff]  ;;  %v479_v18 = vld [vmem:[#allocation6 + $0xb8] sm:$0xff] }
  0xb5   : > { %1101 = vmatprep.subr.mxu0 %v485_v5  ;;  %v425_v14 = vld [vmem:[%s2069_s28 + $0x8] sm:$0xff]  ;;  %v464_v17 = vld [vmem:[#allocation6 + $0x40] sm:$0xff]  ;;  %v463_v19 = vld [vmem:[#allocation6 + $0x38] sm:$0xff] }
  0xb6   : > { %1102 = vmatpush3.msra.mxu0 %v469_v6  ;;  %v465_v15 = vld [vmem:[#allocation6 + $0x48] sm:$0xff]  ;;  %552 = vmatprep.mubr.f32.mxu0 %v425_v14  ;;  %v478_v20 = vld [vmem:[#allocation6 + $0xb0] sm:$0xff]  ;;  %v476_v24 = vld [vmem:[#allocation6 + $0xa0] sm:$0xff]  ;;  %p1089_p10 = scmp.ne.s32.totalorder %s2322_s7, 1 }
  0xb7   : > { %1103 = vmatprep.subr.mxu0 %v484_v7  ;;  %v462_v21 = vld [vmem:[#allocation6 + $0x30] sm:$0xff]  ;;  %v477_v22 = vld [vmem:[#allocation6 + $0xa8] sm:$0xff]  ;;  %v460_v25 = vld [vmem:[#allocation6 + $0x20] sm:$0xff] }
  0xb8   : > { %1104 = vmatpush3.msra.mxu0 %v468_v8  ;;  %v461_v23 = vld [vmem:[#allocation6 + $0x28] sm:$0xff]  ;;  %v475_v26 = vld [vmem:[#allocation6 + $0x98] sm:$0xff]  ;;  %v474_v28 = vld [vmem:[#allocation6 + $0x90] sm:$0xff] }
  0xb9   : > { %1105 = vmatprep.subr.mxu0 %v483_v9  ;;  %v459_v27 = vld [vmem:[#allocation6 + $0x18] sm:$0xff]  ;;  %v458_v29 = vld [vmem:[#allocation6 + $0x10] sm:$0xff]  ;;  %v473_v30 = vld [vmem:[#allocation6 + $0x88] sm:$0xff] }
  0xba   : > { %1106 = vmatpush3.msra.mxu0 %v467_v10  ;;  %v457_v31 = vld [vmem:[#allocation6 + $0x8] sm:$0xff]  ;;  %v472_v32 = vld [vmem:[#allocation6 + $0x80] sm:$0xff]  ;;  %v427_v35 = vld [vmem:[%s2069_s28 + $0x18] sm:$0xff] }
  0xbb   : > { %1107 = vmatprep.subr.mxu0 %v482_v11  ;;  %v456_v33 = vld [vmem:[#allocation6] sm:$0xff]  ;;  %v426_v36 = vld [vmem:[%s2069_s28 + $0x10] sm:$0xff]  ;;  %v429_v37 = vld [vmem:[%s2069_s28 + $0x28] sm:$0xff] }
  0xbc   : > { %1108 = vmatpush3.msra.mxu0 %v466_v12  ;;  %v424_v34 = vld [vmem:[%s2069_s28] sm:$0xff]  ;;  %v431_v39 = vld [vmem:[%s2069_s28 + $0x38] sm:$0xff]  ;;  %v430_v40 = vld [vmem:[%s2069_s28 + $0x30] sm:$0xff] }
  0xbd   : > { %1109 = vmatprep.subr.mxu0 %v481_v13  ;;  %v428_v38 = vld [vmem:[%s2069_s28 + $0x20] sm:$0xff]  ;;  %v433_v41 = vld [vmem:[%s2069_s28 + $0x48] sm:$0xff]  ;;  %v435_v43 = vld [vmem:[%s2069_s28 + $0x58] sm:$0xff] }
  0xbe   : > { %1110 = vmatpush3.msra.mxu0 %v465_v15  ;;  %v432_v42 = vld [vmem:[%s2069_s28 + $0x40] sm:$0xff]  ;;  %v434_v44 = vld [vmem:[%s2069_s28 + $0x50] sm:$0xff]  ;;  %v437_v45 = vld [vmem:[%s2069_s28 + $0x68] sm:$0xff] }
  0xbf   : > { %1111 = vmatprep.subr.mxu0 %v480_v16  ;;  %v436_v46 = vld [vmem:[%s2069_s28 + $0x60] sm:$0xff]  ;;  %v439_v47 = vld [vmem:[%s2069_s28 + $0x78] sm:$0xff]  ;;  %v438_v48 = vld [vmem:[%s2069_s28 + $0x70] sm:$0xff] }
  0xc0   : > { %1112 = vmatpush3.msra.mxu0 %v464_v17  ;;  %v441_v49 = vld [vmem:[%s2069_s28 + $0x88] sm:$0xff]  ;;  %v440_v50 = vld [vmem:[%s2069_s28 + $0x80] sm:$0xff]  ;;  %v443_v51 = vld [vmem:[%s2069_s28 + $0x98] sm:$0xff] }
  0xc1   : > { %1113 = vmatprep.subr.mxu0 %v479_v18  ;;  %v442_v52 = vld [vmem:[%s2069_s28 + $0x90] sm:$0xff]  ;;  %v445_v53 = vld [vmem:[%s2069_s28 + $0xa8] sm:$0xff]  ;;  %v444_v54 = vld [vmem:[%s2069_s28 + $0xa0] sm:$0xff] }
  0xc2   : > { %1114 = vmatpush3.msra.mxu0 %v463_v19  ;;  %v447_v55 = vld [vmem:[%s2069_s28 + $0xb8] sm:$0xff]  ;;  %v446_v56 = vld [vmem:[%s2069_s28 + $0xb0] sm:$0xff]  ;;  %v449_v57 = vld [vmem:[%s2069_s28 + $0xc8] sm:$0xff] }
  0xc3   : > { %1115 = vmatprep.subr.mxu0 %v478_v20  ;;  %v448_v58 = vld [vmem:[%s2069_s28 + $0xc0] sm:$0xff]  ;;  %v451_v59 = vld [vmem:[%s2069_s28 + $0xd8] sm:$0xff]  ;;  %v450_v60 = vld [vmem:[%s2069_s28 + $0xd0] sm:$0xff] }
  0xc4   : > { %1116 = vmatpush3.msra.mxu0 %v462_v21  ;;  %v453_v61 = vld [vmem:[%s2069_s28 + $0xe8] sm:$0xff]  ;;  %v452_v62 = vld [vmem:[%s2069_s28 + $0xe0] sm:$0xff]  ;;  %v455_v63 = vld [vmem:[%s2069_s28 + $0xf8] sm:$0xff] }
  0xc5   : > { %1117 = vmatprep.subr.mxu0 %v477_v22  ;;  %v454_v0 = vld [vmem:[%s2069_s28 + $0xf0] sm:$0xff]  ;;  %v637_v1 = vld [vmem:[%s2080_s15] sm:$0xff] }
  0xc6   : > { %1118 = vmatpush3.msra.mxu0 %v461_v23  ;;  %1229 = vmatprep.mubr.f32.mxu1 %v637_v1 }
  0xc7   : > { %1119 = vmatprep.subr.mxu0 %v476_v24 }
  0xc8   : > { %1120 = vmatpush3.msra.mxu0 %v460_v25 }
  0xc9   : > { %1121 = vmatprep.subr.mxu0 %v475_v26 }
  0xca   : > { %1122 = vmatpush3.msra.mxu0 %v459_v27 }
  0xcb   : > { %1123 = vmatprep.subr.mxu0 %v474_v28 }
  0xcc   : > { %1124 = vmatpush3.msra.mxu0 %v458_v29 }
  0xcd   : > { %1125 = vmatprep.subr.mxu0 %v473_v30 }
  0xce   : > { %1126 = vmatpush3.msra.mxu0 %v457_v31 }
  0xcf   : > { %1127 = vmatprep.subr.mxu0 %v472_v32 }
  0xd0   : > { %1128 = vmatpush3.msra.mxu0 %v456_v33 }
  0xd1   : > { %553 = vmatmul.mubr.f32.vlgmr.msra.gmra.mxu0 %v424_v34 }
  0xd2   : > { %557 = vmatprep.mubr.f32.mxu0 %v427_v35 }
  0xd5   : > { %558 = vmatmul.mubr.f32.gmra.mxu0 %v426_v36 }
  0xd6   : > { %562 = vmatprep.mubr.f32.mxu0 %v429_v37 }
  0xd9   : > { %563 = vmatmul.mubr.f32.gmra.mxu0 %v428_v38 }
  0xda   : > { %567 = vmatprep.mubr.f32.mxu0 %v431_v39 }
  0xdd   : > { %568 = vmatmul.mubr.f32.gmra.mxu0 %v430_v40 }
  0xde   : > { %572 = vmatprep.mubr.f32.mxu0 %v433_v41 }
  0xe1   : > { %573 = vmatmul.mubr.f32.gmra.mxu0 %v432_v42 }
  0xe2   : > { %577 = vmatprep.mubr.f32.mxu0 %v435_v43 }
  0xe5   : > { %578 = vmatmul.mubr.f32.gmra.mxu0 %v434_v44 }
  0xe6   : > { %582 = vmatprep.mubr.f32.mxu0 %v437_v45 }
  0xe9   : > { %583 = vmatmul.mubr.f32.gmra.mxu0 %v436_v46 }
  0xea   : > { %587 = vmatprep.mubr.f32.mxu0 %v439_v47 }
  0xed   : > { %588 = vmatmul.mubr.f32.gmra.mxu0 %v438_v48 }
  0xee   : > { %592 = vmatprep.mubr.f32.mxu0 %v441_v49 }
  0xf1   : > { %593 = vmatmul.mubr.f32.gmra.mxu0 %v440_v50  ;;  %v638_v50 = vld [vmem:[%s2080_s15 + $0x8] sm:$0xff] }
  0xf2   : > { %597 = vmatprep.mubr.f32.mxu0 %v443_v51  ;;  %v639_v51 = vld [vmem:[%s2080_s15 + $0x10] sm:$0xff] }
  0xf5   : > { %598 = vmatmul.mubr.f32.gmra.mxu0 %v442_v52  ;;  %v640_v52 = vld [vmem:[%s2080_s15 + $0x18] sm:$0xff] }
  0xf6   : > { %602 = vmatprep.mubr.f32.mxu0 %v445_v53  ;;  %v634_v53 = vld [vmem:[#allocation2] sm:$0xff] }
  0xf9   : > { %603 = vmatmul.mubr.f32.gmra.mxu0 %v444_v54 }
  0xfa   : > { %607 = vmatprep.mubr.f32.mxu0 %v447_v55  ;;  %v633_v55 = vld [vmem:[#allocation2 + $0x10] sm:$0xff] }
  0xfd   : > { %608 = vmatmul.mubr.f32.gmra.mxu0 %v446_v56 }
  0xfe   : > { %612 = vmatprep.mubr.f32.mxu0 %v449_v57 }
 0x101   : > { %613 = vmatmul.mubr.f32.gmra.mxu0 %v448_v58  ;;  %v636_v58 = vld [vmem:[#allocation2 + $0x8] sm:$0xff] }
 0x102   : > { %617 = vmatprep.mubr.f32.mxu0 %v451_v59 }
 0x105   : > { %618 = vmatmul.mubr.f32.gmra.mxu0 %v450_v60 }
 0x106   : > { %622 = vmatprep.mubr.f32.mxu0 %v453_v61  ;;  %v635_v61 = vld [vmem:[#allocation2 + $0x18] sm:$0xff] }
 0x109   : > { %623 = vmatmul.mubr.f32.gmra.mxu0 %v452_v62 }
 0x10a   : > { %627 = vmatprep.mubr.f32.mxu0 %v455_v63 }
 0x10d   : > { %628 = vmatmul.mubr.f32.gmra.mxu0 %v454_v0 }
 0x191   : > { %v1129_v2 = vpop.f32.mrf.mxu0 }
 0x193   : > { %v1130_v3 = vpop.f32.mrf.mxu0 }
 0x194   : > { %v2133_v4 = vadd.f32 %v1130_v3, %v1129_v2 }
 0x195   : > { %v1132_v5 = vpop.f32.mrf.mxu0 }
 0x197   : > { %v1133_v6 = vpop.f32.mrf.mxu0 }
 0x198   : > { %v2135_v7 = vadd.f32 %v1133_v6, %v1132_v5 }
 0x199   : > { %v1135_v8 = vpop.f32.mrf.mxu0 }
 0x19b   : > { %v1136_v9 = vpop.f32.mrf.mxu0 }
 0x19c   : > { %v2137_v10 = vadd.f32 %v1136_v9, %v1135_v8 }
 0x19d   : > { %v1138_v11 = vpop.f32.mrf.mxu0 }
 0x19f   : > { %v1139_v12 = vpop.f32.mrf.mxu0 }
 0x1a0   : > { %v1140_v13 = vadd.f32 %v1139_v12, %v1138_v11 }
 0x1a1   : > { %v1141_v14 = vpop.f32.mrf.mxu0 }
 0x1a3   : > { %v1142_v15 = vpop.f32.mrf.mxu0 }
 0x1a4   : > { %v1143_v16 = vadd.f32 %v1142_v15, %v1141_v14 }
 0x1a5   : > { %v1144_v17 = vpop.f32.mrf.mxu0 }
 0x1a7   : > { %v1145_v18 = vpop.f32.mrf.mxu0 }
 0x1a8   : > { %v1146_v49 = vadd.f32 %v1145_v18, %v1144_v17 }
 0x1a9   : > { %v1147_v19 = vpop.f32.mrf.mxu0 }
 0x1ab   : > { %v1148_v20 = vpop.f32.mrf.mxu0 }
 0x1ac   : > { %v1149_v48 = vadd.f32 %v1148_v20, %v1147_v19 }
 0x1ad   : > { %v1150_v21 = vpop.f32.mrf.mxu0 }
 0x1af   : > { %v1151_v22 = vpop.f32.mrf.mxu0 }
 0x1b0   : > { %v1152_v47 = vadd.f32 %v1151_v22, %v1150_v21 }
 0x1b1   : > { %v1153_v23 = vpop.f32.mrf.mxu0 }
 0x1b3   : > { %v1154_v24 = vpop.f32.mrf.mxu0 }
 0x1b4   : > { %v1155_v46 = vadd.f32 %v1154_v24, %v1153_v23 }
 0x1b5   : > { %v1156_v25 = vpop.f32.mrf.mxu0 }
 0x1b7   : > { %v1157_v26 = vpop.f32.mrf.mxu0 }
 0x1b8   : > { %v1158_v45 = vadd.f32 %v1157_v26, %v1156_v25 }
 0x1b9   : > { %v1159_v27 = vpop.f32.mrf.mxu0 }
 0x1bb   : > { %v1160_v28 = vpop.f32.mrf.mxu0 }
 0x1bc   : > { %v1161_v44 = vadd.f32 %v1160_v28, %v1159_v27 }
 0x1bd   : > { %v1162_v29 = vpop.f32.mrf.mxu0 }
 0x1bf   : > { %v1163_v30 = vpop.f32.mrf.mxu0 }
 0x1c0   : > { %v1164_v43 = vadd.f32 %v1163_v30, %v1162_v29 }
 0x1c1   : > { %v1165_v31 = vpop.f32.mrf.mxu0 }
 0x1c3   : > { %v1166_v32 = vpop.f32.mrf.mxu0 }
 0x1c4   : > { %v1167_v42 = vadd.f32 %v1166_v32, %v1165_v31 }
 0x1c5   : > { %v1168_v33 = vpop.f32.mrf.mxu0 }
 0x1c7   : > { %v1169_v34 = vpop.f32.mrf.mxu0 }
 0x1c8   : > { %v1170_v41 = vadd.f32 %v1169_v34, %v1168_v33 }
 0x1c9   : > { %v1171_v35 = vpop.f32.mrf.mxu0 }
 0x1cb   : > { %v1172_v36 = vpop.f32.mrf.mxu0 }
 0x1cc   : > { %v1173_v40 = vadd.f32 %v1172_v36, %v1171_v35 }
 0x1cd   : > { %v1174_v37 = vpop.f32.mrf.mxu0 }
 0x1cf   : > { %v1175_v38 = vpop.f32.mrf.mxu0 }
 0x1d0   : > { %v1176_v39 = vadd.f32 %v1175_v38, %v1174_v37 }
 0x1d2   : > { %1197 = vmatprep.subr.mxu1 %v1176_v39 }
 0x1d3   : > { %1198 = vmatpush3.msra.mxu1 %v1176_v39 }
 0x1d4   : > { %1199 = vmatprep.subr.mxu1 %v1173_v40 }
 0x1d5   : > { %1200 = vmatpush3.msra.mxu1 %v1173_v40 }
 0x1d6   : > { %1201 = vmatprep.subr.mxu1 %v1170_v41 }
 0x1d7   : > { %1202 = vmatpush3.msra.mxu1 %v1170_v41 }
 0x1d8   : > { %1203 = vmatprep.subr.mxu1 %v1167_v42 }
 0x1d9   : > { %1204 = vmatpush3.msra.mxu1 %v1167_v42 }
 0x1da   : > { %1205 = vmatprep.subr.mxu1 %v1164_v43 }
 0x1db   : > { %1206 = vmatpush3.msra.mxu1 %v1164_v43 }
 0x1dc   : > { %1207 = vmatprep.subr.mxu1 %v1161_v44 }
 0x1dd   : > { %1208 = vmatpush3.msra.mxu1 %v1161_v44 }
 0x1de   : > { %1209 = vmatprep.subr.mxu1 %v1158_v45 }
 0x1df   : > { %1210 = vmatpush3.msra.mxu1 %v1158_v45 }
 0x1e0   : > { %1211 = vmatprep.subr.mxu1 %v1155_v46 }
 0x1e1   : > { %1212 = vmatpush3.msra.mxu1 %v1155_v46 }
 0x1e2   : > { %1213 = vmatprep.subr.mxu1 %v1152_v47 }
 0x1e3   : > { %1214 = vmatpush3.msra.mxu1 %v1152_v47 }
 0x1e4   : > { %1215 = vmatprep.subr.mxu1 %v1149_v48 }
 0x1e5   : > { %1216 = vmatpush3.msra.mxu1 %v1149_v48 }
 0x1e6   : > { %1217 = vmatprep.subr.mxu1 %v1146_v49 }
 0x1e7   : > { %1218 = vmatpush3.msra.mxu1 %v1146_v49 }
 0x1e8   : > { %1219 = vmatprep.subr.mxu1 %v1143_v16 }
 0x1e9   : > { %1220 = vmatpush3.msra.mxu1 %v1143_v16 }
 0x1ea   : > { %1221 = vmatprep.subr.mxu1 %v1140_v13 }
 0x1eb   : > { %1222 = vmatpush3.msra.mxu1 %v1140_v13 }
 0x1ec   : > { %1223 = vmatprep.subr.mxu1 %v2137_v10 }
 0x1ed   : > { %1224 = vmatpush3.msra.mxu1 %v2137_v10 }
 0x1ee   : > { %1225 = vmatprep.subr.mxu1 %v2135_v7 }
 0x1ef   : > { %1226 = vmatpush3.msra.mxu1 %v2135_v7 }
 0x1f0   : > { %1227 = vmatprep.subr.mxu1 %v2133_v4 }
 0x1f1   : > { %1228 = vmatpush3.msra.mxu1 %v2133_v4 }
 0x1f2   : > { %1230 = vmatmul.mubr.f32.vlgmr.msra.gmra.mxu1 %v638_v50 }
 0x1f3   : > { %1232 = vmatprep.mubr.f32.mxu1 %v639_v51 }
 0x1f6   : > { %1233 = vmatmul.mubr.f32.gmra.mxu1 %v640_v52 }
 0x2b2   : > { %v1231_v54 = vpop.f32.mrf.mxu1 }
 0x2b3   : > { %v727_v56 = vadd.f32 %v1231_v54, %v634_v53 }
 0x2b4   : > { %v707_v57 = vpop.f32.mrf.mxu1 }
 0x2b5   : > { %731 = vst [vmem:[#allocation2] sm:$0xff] %v727_v56  ;;  %v726_v59 = vadd.f32 %v707_v57, %v633_v55 }
 0x2b6   : > { %v1234_v60 = vpop.f32.mrf.mxu1 }
 0x2b7   : > { %730 = vst [vmem:[#allocation2 + $0x10] sm:$0xff] %v726_v59  ;;  %v729_v62 = vadd.f32 %v1234_v60, %v636_v58  ;;  %737 = sbr.rel (%p1089_p10) target bundleno = 934 (0x3a6), region = 76 }
 0x2b8   : > { %v717_v63 = vpop.f32.mrf.mxu1 }
 0x2b9   : > { %733 = vst [vmem:[#allocation2 + $0x8] sm:$0xff] %v729_v62  ;;  %v728_v0 = vadd.f32 %v717_v63, %v635_v61 }
 0x2bb   : > { %732 = vst [vmem:[#allocation2 + $0x18] sm:$0xff] %v728_v0 }
 0x2bc   : > { %v793_v1 = vld [vmem:[#allocation12 + $0xf8] sm:$0xff]  ;;  %v792_v2 = vld [vmem:[#allocation12 + $0xf0] sm:$0xff]  ;;  %v791_v3 = vld [vmem:[#allocation12 + $0xe8] sm:$0xff]  ;;  %v1780_v55 = vmov 0.0  }
 0x2bd   : > { %794 = vmatprep.subr.mxu0 %v793_v1  ;;  %1235 = vmatprep.subr.mxu1 %v793_v1  ;;  %v790_v4 = vld [vmem:[#allocation12 + $0xe0] sm:$0xff]  ;;  %v789_v5 = vld [vmem:[#allocation12 + $0xd8] sm:$0xff]  ;;  %v788_v6 = vld [vmem:[#allocation12 + $0xd0] sm:$0xff] }
 0x2be   : > { %795 = vmatpush1.msra.mxu0 %v792_v2  ;;  %1251 = vmatpush1.msra.mxu1 %v792_v2  ;;  %v787_v7 = vld [vmem:[#allocation12 + $0xc8] sm:$0xff]  ;;  %v786_v8 = vld [vmem:[#allocation12 + $0xc0] sm:$0xff]  ;;  %v785_v9 = vld [vmem:[#allocation12 + $0xb8] sm:$0xff] }
 0x2bf   : > { %796 = vmatprep.subr.mxu0 %v791_v3  ;;  %1236 = vmatprep.subr.mxu1 %v791_v3  ;;  %v784_v10 = vld [vmem:[#allocation12 + $0xb0] sm:$0xff]  ;;  %v783_v11 = vld [vmem:[#allocation12 + $0xa8] sm:$0xff]  ;;  %v782_v12 = vld [vmem:[#allocation12 + $0xa0] sm:$0xff] }
 0x2c0   : > { %797 = vmatpush1.msra.mxu0 %v790_v4  ;;  %1252 = vmatpush1.msra.mxu1 %v790_v4  ;;  %v781_v13 = vld [vmem:[#allocation12 + $0x98] sm:$0xff]  ;;  %v780_v14 = vld [vmem:[#allocation12 + $0x90] sm:$0xff]  ;;  %v779_v15 = vld [vmem:[#allocation12 + $0x88] sm:$0xff] }
 0x2c1   : > { %798 = vmatprep.subr.mxu0 %v789_v5  ;;  %1237 = vmatprep.subr.mxu1 %v789_v5  ;;  %v778_v16 = vld [vmem:[#allocation12 + $0x80] sm:$0xff]  ;;  %v777_v17 = vld [vmem:[#allocation12 + $0x78] sm:$0xff]  ;;  %v776_v18 = vld [vmem:[#allocation12 + $0x70] sm:$0xff] }
 0x2c2   : > { %799 = vmatpush1.msra.mxu0 %v788_v6  ;;  %1253 = vmatpush1.msra.mxu1 %v788_v6  ;;  %v775_v19 = vld [vmem:[#allocation12 + $0x68] sm:$0xff]  ;;  %v774_v20 = vld [vmem:[#allocation12 + $0x60] sm:$0xff]  ;;  %v773_v21 = vld [vmem:[#allocation12 + $0x58] sm:$0xff] }
 0x2c3   : > { %800 = vmatprep.subr.mxu0 %v787_v7  ;;  %1238 = vmatprep.subr.mxu1 %v787_v7  ;;  %v738_v22 = vld [vmem:[#allocation2 + $0x10] sm:$0xff]  ;;  %v742_v23 = vld [vmem:[#allocation10] sm:$0xff]  ;;  %v740_v25 = vld [vmem:[#allocation2 + $0x18] sm:$0xff] }
 0x2c4   : > { %801 = vmatpush1.msra.mxu0 %v786_v8  ;;  %1254 = vmatpush1.msra.mxu1 %v786_v8  ;;  %v772_v24 = vld [vmem:[#allocation12 + $0x50] sm:$0xff]  ;;  %v771_v27 = vld [vmem:[#allocation12 + $0x48] sm:$0xff]  ;;  %v770_v28 = vld [vmem:[#allocation12 + $0x40] sm:$0xff]  ;;  %v746_v31 = vmul.f32 %v742_v23, %v738_v22 }
 0x2c5   : > { %802 = vmatprep.subr.mxu0 %v785_v9  ;;  %1239 = vmatprep.subr.mxu1 %v785_v9  ;;  %v744_v26 = vld [vmem:[#allocation10 + $0x10] sm:$0xff]  ;;  %v769_v29 = vld [vmem:[#allocation12 + $0x38] sm:$0xff]  ;;  %v750_v32 = vld [vmem:[#allocation9] sm:$0xff] }
 0x2c6   : > { %803 = vmatpush1.msra.mxu0 %v784_v10  ;;  %1255 = vmatpush1.msra.mxu1 %v784_v10  ;;  %v768_v30 = vld [vmem:[#allocation12 + $0x30] sm:$0xff]  ;;  %v748_v33 = vmul.f32 %v744_v26, %v740_v25  ;;  %v739_v35 = vld [vmem:[#allocation2] sm:$0xff]  ;;  %v743_v36 = vld [vmem:[#allocation10 + $0x8] sm:$0xff]  ;;  %v754_v41 = vadd.f32 %v750_v32, %v746_v31 }
 0x2c7   : > { %804 = vmatprep.subr.mxu0 %v783_v11  ;;  %1240 = vmatprep.subr.mxu1 %v783_v11  ;;  %v752_v34 = vld [vmem:[#allocation9 + $0x10] sm:$0xff]  ;;  %v741_v37 = vld [vmem:[#allocation2 + $0x8] sm:$0xff]  ;;  %v745_v38 = vld [vmem:[#allocation10 + $0x18] sm:$0xff]  ;;  %v747_v44 = vmul.f32 %v743_v36, %v739_v35 }
 0x2c8   : > { %805 = vmatpush1.msra.mxu0 %v782_v12  ;;  %1256 = vmatpush1.msra.mxu1 %v782_v12  ;;  %v767_v39 = vld [vmem:[#allocation12 + $0x28] sm:$0xff]  ;;  %v766_v40 = vld [vmem:[#allocation12 + $0x20] sm:$0xff]  ;;  %v765_v42 = vld [vmem:[#allocation12 + $0x18] sm:$0xff]  ;;  %v756_v43 = vadd.f32 %v752_v34, %v748_v33  ;;  %v749_v45 = vmul.f32 %v745_v38, %v741_v37  ;;  %v758_v51 = vmax.f32 %v754_v41, 0.0 }
 0x2c9   : > { %806 = vmatprep.subr.mxu0 %v781_v13  ;;  %1241 = vmatprep.subr.mxu1 %v781_v13  ;;  %v764_v46 = vld [vmem:[#allocation12 + $0x10] sm:$0xff]  ;;  %v751_v47 = vld [vmem:[#allocation9 + $0x8] sm:$0xff]  ;;  %v753_v48 = vld [vmem:[#allocation9 + $0x18] sm:$0xff] }
 0x2ca   : > { %807 = vmatpush1.msra.mxu0 %v780_v14  ;;  %1257 = vmatpush1.msra.mxu1 %v780_v14  ;;  %v763_v49 = vld [vmem:[#allocation12 + $0x8] sm:$0xff]  ;;  %v762_v50 = vld [vmem:[#allocation12] sm:$0xff]  ;;  %v760_v52 = vmax.f32 %v756_v43, 0.0  ;;  %v755_v53 = vadd.f32 %v751_v47, %v747_v44  ;;  %v757_v54 = vadd.f32 %v753_v48, %v749_v45 }
 0x2cb   : > { %808 = vmatprep.subr.mxu0 %v779_v15  ;;  %1242 = vmatprep.subr.mxu1 %v779_v15 }
 0x2cc   : > { %809 = vmatpush1.msra.mxu0 %v778_v16  ;;  %1258 = vmatpush1.msra.mxu1 %v778_v16  ;;  %v759_v56 = vmax.f32 %v755_v53, 0.0  ;;  %v761_v57 = vmax.f32 %v757_v54, 0.0 }
 0x2cd   : > { %810 = vmatprep.subr.mxu0 %v777_v17  ;;  %1243 = vmatprep.subr.mxu1 %v777_v17 }
 0x2ce   : > { %811 = vmatpush1.msra.mxu0 %v776_v18  ;;  %1259 = vmatpush1.msra.mxu1 %v776_v18 }
 0x2cf   : > { %812 = vmatprep.subr.mxu0 %v775_v19  ;;  %1244 = vmatprep.subr.mxu1 %v775_v19 }
 0x2d0   : > { %813 = vmatpush1.msra.mxu0 %v774_v20  ;;  %1260 = vmatpush1.msra.mxu1 %v774_v20 }
 0x2d1   : > { %814 = vmatprep.subr.mxu0 %v773_v21  ;;  %1245 = vmatprep.subr.mxu1 %v773_v21 }
 0x2d2   : > { %815 = vmatpush1.msra.mxu0 %v772_v24  ;;  %1261 = vmatpush1.msra.mxu1 %v772_v24 }
 0x2d3   : > { %816 = vmatprep.subr.mxu0 %v771_v27  ;;  %1246 = vmatprep.subr.mxu1 %v771_v27 }
 0x2d4   : > { %817 = vmatpush1.msra.mxu0 %v770_v28  ;;  %1262 = vmatpush1.msra.mxu1 %v770_v28 }
 0x2d5   : > { %818 = vmatprep.subr.mxu0 %v769_v29  ;;  %1247 = vmatprep.subr.mxu1 %v769_v29 }
 0x2d6   : > { %819 = vmatpush1.msra.mxu0 %v768_v30  ;;  %1263 = vmatpush1.msra.mxu1 %v768_v30 }
 0x2d7   : > { %820 = vmatprep.subr.mxu0 %v767_v39  ;;  %1248 = vmatprep.subr.mxu1 %v767_v39 }
 0x2d8   : > { %821 = vmatpush1.msra.mxu0 %v766_v40  ;;  %1264 = vmatpush1.msra.mxu1 %v766_v40 }
 0x2d9   : > { %822 = vmatprep.subr.mxu0 %v765_v42  ;;  %1249 = vmatprep.subr.mxu1 %v765_v42 }
 0x2da   : > { %823 = vmatpush1.msra.mxu0 %v764_v46  ;;  %1265 = vmatpush1.msra.mxu1 %v764_v46 }
 0x2db   : > { %824 = vmatprep.subr.mxu0 %v763_v49  ;;  %1250 = vmatprep.subr.mxu1 %v763_v49 }
 0x2dc   : > { %825 = vmatpush1.msra.mxu0 %v762_v50  ;;  %1266 = vmatpush1.msra.mxu1 %v762_v50 }
 0x2dd   : > { %858 = vmatprep.mubr.f32.mxu0 %v1780_v55  ;;  %870 = vmatprep.mubr.f32.mxu1 %v1780_v55 }
 0x2de   : > { %859 = vmatmul.mubr.f32.vlgmr.msra.gmra.mxu0 %v758_v51  ;;  %871 = vmatmul.mubr.f32.vlgmr.msra.gmra.mxu1 %v760_v52 }
 0x2df   : > { %864 = vmatprep.mubr.f32.mxu0 %v1780_v55  ;;  %876 = vmatprep.mubr.f32.mxu1 %v1780_v55 }
 0x2e2   : > { %865 = vmatmul.mubr.f32.gmra.mxu0 %v759_v56  ;;  %877 = vmatmul.mubr.f32.gmra.mxu1 %v761_v57 }
 0x39e   : > { %v860_v58 = vpop.f32.mrf.mxu0  ;;  %v872_v59 = vpop.f32.mrf.mxu1 }
 0x39f   : > { %883 = vst [vmem:[%s2097_s30] sm:$0xff] %v860_v58  ;;  %887 = vst [vmem:[%s2097_s30 + $0x20] sm:$0xff] %v872_v59 }
 0x3a0   : > { %v862_v60 = vpop.f32.mrf.mxu0  ;;  %v874_v61 = vpop.f32.mrf.mxu1 }
 0x3a1   : > { %884 = vst [vmem:[%s2097_s30 + $0x8] sm:$0xff] %v862_v60  ;;  %888 = vst [vmem:[%s2097_s30 + $0x28] sm:$0xff] %v874_v61 }
 0x3a2   : > { %v866_v62 = vpop.f32.mrf.mxu0  ;;  %v878_v63 = vpop.f32.mrf.mxu1 }
 0x3a3   : > { %885 = vst [vmem:[%s2097_s30 + $0x10] sm:$0xff] %v866_v62  ;;  %889 = vst [vmem:[%s2097_s30 + $0x30] sm:$0xff] %v878_v63 }
 0x3a4   : > { %v868_v0 = vpop.f32.mrf.mxu0  ;;  %v880_v1 = vpop.f32.mrf.mxu1 }
 0x3a5   : > { %886 = vst [vmem:[%s2097_s30 + $0x18] sm:$0xff] %v868_v0  ;;  %890 = vst [vmem:[%s2097_s30 + $0x38] sm:$0xff] %v880_v1 }
 0x3a6 PF: > { %s2323_s13 = sld [smem:[#allocation24_spill]]  ;;  %s908_s17 = sshll.u32 %s2097_s30, 4  ;;  %s2164_s17 = int_to_ptr.vmem [resolvable:$true] %s908_s17 }
 0x3a7   : > { %s2326_s28 = sld [smem:[#allocation35_spill]]  ;;  %s2168_s15 = scalar_lea.sflag [#allocation5], %s408_s18 }
 0x3a8   : > { %s1607_s20 = scalar_lea.vmem %s2164_s17, 1024  ;;  %s1781_s21 = smov [#allocation13]  }
 0x3a9   : > { %p1608_p7 = scmp.ne.s32.totalorder %s2164_s17, %s1607_s20  ;;  %s1611_s6 = sshll.u32 %s1781_s21, 4  ;;  %s1612_s6 = int_to_ptr.vmem [resolvable:$false] %s1611_s6 }
 0x3aa   : > { %s1613_s7 = scalar_lea.vmem %s1612_s6, 2048  ;;  %p1614_p5 = scmp.lt.s32.totalorder %s2164_s17, %s1612_s6 }
 0x3ab   : > { %p1609_p9 = pnand %p1608_p7, %p1904_p6  ;;  %p1615_p8 = scmp.lt.s32.totalorder %s1613_s7, %s1607_s20 }
 0x3ac   : > { %s1096_s4 = sshll.u32 %s2323_s13, 10 }
 0x3ad   : > { %s2327_s12 = smov %s2326_s28  ;;  %s2161_s11 = scalar_lea.hbm %s2326_s28, %s1096_s4 }
 0x3ae   : > { %p1610_p1 = pneg %p1609_p9  ;;  %p1616_p3 = por %p1615_p8, %p1614_p5 }
 0x3b0   : > { %p1617_p0 = pnand %p1616_p3, %p1610_p1 }
 0x3b2   : > { %1620 = shalt.err (!%p1617_p0)
}
 0x3b3   : > { %s1621_s18 = scalar_lea.hbm %s2161_s11, 1024  ;;  %s1625_s24 = scalar_lea.hbm %s2327_s12, 2048 }
 0x3b4   : > { %p1622_p11 = scmp.ne.s32.totalorder %s2161_s11, %s1621_s18  ;;  %p1626_p12 = scmp.lt.s32.totalorder %s2161_s11, %s2327_s12 }
 0x3b5   : > { %p1627_p4 = scmp.lt.s32.totalorder %s1625_s24, %s1621_s18 }
 0x3b6   : > { %p1623_p2 = pnand %p1622_p11, %p1904_p6 }
 0x3b7   : > { %p1628_p10 = por %p1627_p4, %p1626_p12 }
 0x3b8   : > { %p1624_p13 = pneg %p1623_p2 }
 0x3ba   : > { %p1629_p7 = pnand %p1628_p10, %p1624_p13 }
 0x3bc   : > { %1632 = shalt.err (!%p1629_p7)
}
 0x3bd   : > { %s1782_s14 = smov 256   ;;  %s1783_s28 = smov 16  }
 0x3be   : > { %1287 = dma.vmem_to_hbm [thread:$0]  (%p1904_p6), %s2164_s17, 1024, %s2161_s11, %s2168_s15, %s1782_s14, %s1782_s14, %s1783_s28  }
 0x3bf PF: > { %s2328_s20 = sld [smem:[#allocation20_spill]]  ;;  %p1322_p9 = scmp.ge.s32.totalorder %s1767_s10, 2 }
 0x3c0   : > { %s2329_s21 = sld [smem:[#allocation28_spill]] }
 0x3c5   : > { %s923_s6 = sand.u32 1, %s2328_s20  }
 0x3c6   : > { %p2330_p1 = scmp.ne.s32.totalorder %s2329_s21, 0  ;;  %s924_s7 = scalar_lea.sflag [#allocation5], %s923_s6 }
 0x3c8   : > { %p1310_p5 = pnand %p1322_p9, %p2330_p1 }
 0x3ca   : > { %p1311_p8 = pneg %p1310_p5 }
 0x3cc   : > { %1710 = dma.done.wait (%p1311_p8), %s924_s7, 1024  }
 0x3cd   : > { %1712 = vsyncadd (%p1311_p8), %s924_s7, 4294966272  ;;  %s24_s10 = sadd.s32 1, %s1767_s10   ;;  %s2332_s21 = sld [smem:[#allocation21_spill]] }
 0x3ce   : > { %p2196_p3 = scmp.ge.s32.totalorder %s24_s10, 6   ;;  %s2333_s16 = sld [smem:[#allocation22_spill]] }
 0x3cf   : > { %s2334_s11 = sld [smem:[#allocation30_spill]]  ;;  %s2336_s22 = smov %s1723_s23 }
 0x3d0   : > { %s2335_s17 = sld [smem:[#allocation31_spill]]  ;;  %s2337_s23 = smov %s1985_s27 }
 0x3d1   : > { %s2338_s24 = smov %s1731_s25  ;;  %s2339_s25 = smov %s1735_s26 }
 0x3d2   : > { %s2340_s26 = smov %s2043_s19  ;;  %s2342_s28 = smov %s1747_s29 }
 0x3d3   : > { %s2343_s29 = smov %s1988_s1  ;;  %s2344_s30 = smov %s1759_s8 }
 0x3d4   : > { %s2341_s27 = smov %s2333_s16  ;;  %s2345_s7 = smov %s1763_s9 }
 0x3d5   : > { %s2346_s8 = smov %s2334_s11  ;;  %23 = sbr.rel (!%p2196_p3) target bundleno = 16 (0x10), region = 126 }
 0x3d6   : > { %s2347_s9 = smov %s2335_s17 }
 0x3da   :  { %929 = vsyncpa [#allocation4], 1 }
 0x3db   :  { %931 = vsyncpa [#allocation4 + $0x1], 1 }
 0x3dc   :  { %932 = vsyncpa [#allocation7], 1 }
 0x3dd   :  { %933 = vsyncpa [#allocation11], 1 }
 0x3de   :  { %934 = vsyncpa [#allocation5], 1 }
 0x3df   :  { %936 = vsyncpa [#allocation5 + $0x1], 1 }

// kernel: tpu_custom_call.1
= control target key start
LH: loop header
LB: loop body
LE: loop exit
PB: predicated region body
PF: predicated region fallthrough
CT: control target
= control target key end

     0   :  { %s2243_s0 = inlined_call_operand.hbm [shape: f32[2,256,256], index: 0, kind: input, shape index: {}]   ;;  %s2244_s1 = inlined_call_operand.hbm [shape: f32[256,128], index: 1, kind: input, shape index: {}]   ;;  %s2245_s2 = inlined_call_operand.hbm [shape: f32[32,256], index: 2, kind: input, shape index: {}]   ;;  %s2246_s3 = inlined_call_operand.hbm [shape: f32[32,128], index: 3, kind: input, shape index: {}]   ;;  %s2247_s4 = inlined_call_operand.hbm [shape: f32[32,128], index: 4, kind: input, shape index: {}]   ;;  %s2248_s5 = inlined_call_operand.hbm [shape: f32[128,256], index: 5, kind: input, shape index: {}]   ;;  %s2249_s6 = inlined_call_operand.hbm [shape: f32[2,32,256], index: 6, kind: output, shape index: {}]  }
   0x1   :  { %2275 = sst [smem:[#allocation33_spill]] %s2244_s1 }
   0x2   :  { %2276 = sst [smem:[#allocation34_spill]] %s2247_s4 }
   0x3   :  { %2277 = sst [smem:[#allocation35_spill]] %s2249_s6 }
   0x4   :  { %11 = vsyncpa [#allocation4], 0 }
   0x5   :  { %13 = vsyncpa [#allocation4 + $0x1], 0 }
   0x6   :  { %14 = vsyncpa [#allocation7], 0 }
   0x7   :  { %15 = vsyncpa [#allocation11], 0 }
   0x8   :  { %16 = vsyncpa [#allocation5], 0 }
   0x9   :  { %18 = vsyncpa [#allocation5 + $0x1], 0  ;;  %s1819_s21 = smov 0   ;;  %s1821_s22 = smov 0  }
   0xa   :  { %s1823_s23 = smov 0   ;;  %s1825_s24 = smov 0  }
   0xb   :  { %s1827_s25 = smov 0   ;;  %s1829_s26 = smov 0  }
   0xc   :  { %s1831_s27 = smov 0   ;;  %s1833_s28 = smov 0  }
   0xd   :  { %s1835_s29 = smov 0   ;;  %s1837_s30 = smov 0  }
   0xe   :  { %s1839_s7 = smov 0   ;;  %s1841_s8 = smov 0  }
   0xf   :  { %s1843_s9 = smov 0   ;;  %s1845_s10 = smov 0  }
  0x10 LB: > { %2278 = sst [smem:[#allocation20_spill]] %s1715_s21  ;;  %s1888_s11 = sadd.s32 4294967295, %s1767_s10   ;;  %s1767_s10 = sphi %s1845_s10, %s24_s10   ;;  %s1763_s9 = sphi %s1843_s9, %s2347_s9   ;;  %s1759_s8 = sphi %s1841_s8, %s2346_s8   ;;  %s1755_s7 = sphi %s1839_s7, %s2345_s7   ;;  %s1751_s30 = sphi %s1837_s30, %s2344_s30   ;;  %s1747_s29 = sphi %s1835_s29, %s2343_s29   ;;  %s1743_s28 = sphi %s1833_s28, %s2342_s28   ;;  %s1739_s27 = sphi %s1831_s27, %s2341_s27   ;;  %s1735_s26 = sphi %s1829_s26, %s2340_s26   ;;  %s1731_s25 = sphi %s1827_s25, %s2339_s25   ;;  %s1727_s24 = sphi %s1825_s24, %s2338_s24   ;;  %s1723_s23 = sphi %s1823_s23, %s2337_s23   ;;  %s1719_s22 = sphi %s1821_s22, %s2336_s22   ;;  %s1715_s21 = sphi %s1819_s21, %s2332_s21  }
  0x11   : > { %2279 = sst [smem:[#allocation21_spill]] %s1719_s22  ;;  %s1066_s12 = sadd.s32 4294967294, %s1767_s10  }
  0x12   : > { %2280 = sst [smem:[#allocation22_spill]] %s1743_s28  ;;  %p2273_p0 = scmp.eq.s32.totalorder %s1888_s11, 0 }
  0x13   : > { %2281 = sst [smem:[#allocation23_spill]] %s1751_s30  ;;  %p114_p1 = scmp.ne.s32.totalorder %s1731_s25, %s1727_s24 }
  0x14   : > { %2282 = sst [smem:[#allocation24_spill]] %s1755_s7  ;;  %p212_p2 = scmp.ne.s32.totalorder %s1723_s23, %s1719_s22 }
  0x15   : > { %2283 = sst [smem:[#allocation25_spill]] %s1888_s11  ;;  %p213_p3 = scmp.eq.s32.totalorder %s1888_s11, 3 }
  0x16   : > { %p1898_p4 = por %p114_p1, %p2273_p0  ;;  %p218_p5 = scmp.ne.s32.totalorder %s1719_s22, %s1715_s21 }
  0x17   : > { %p1904_p6 = por %p213_p3, %p212_p2  ;;  %p219_p7 = scmp.eq.s32.totalorder %s1066_s12, 3 }
  0x18   : > { %s2284_s13 = scalar_select %p1898_p4, 1, 0 }
  0x19   : > { %s2286_s14 = scalar_select %p1904_p6, 1, 0 }
  0x1a   : > { %2285 = sst [smem:[#allocation26_spill]] %s2284_s13  ;;  %p1067_p8 = scmp.ge.s32.totalorder %s1767_s10, 1 }
  0x1b   : > { %2287 = sst [smem:[#allocation27_spill]] %s2286_s14  ;;  %p226_p9 = scmp.lt.s32.totalorder %s1767_s10, 5 }
  0x1c   : > { %p1910_p10 = por %p219_p7, %p218_p5  ;;  %s1769_s17 = smov [#allocation6]  }
  0x1d   : > { %p1914_p11 = pnand %p1067_p8, %p226_p9  ;;  %s238_s18 = sshll.u32 %s1769_s17, 4  ;;  %s239_s18 = int_to_ptr.vmem [resolvable:$true] %s238_s18 }
  0x1e   : > { %s2288_s15 = scalar_select %p1910_p10, 1, 0 }
  0x1f   : > { %s2290_s16 = scalar_select %p1914_p11, 1, 0 }
  0x20   : > { %2289 = sst [smem:[#allocation28_spill]] %s2288_s15  ;;  %p1289_p12 = pneg %p1914_p11 }
  0x21   : > { %2291 = sst [smem:[#allocation29_spill]] %s2290_s16  ;;  %s1770_s20 = smov [#allocation10]  }
  0x22   : > { %p1922_p13 = pnand %p1289_p12, %p2273_p0  ;;  %s270_s24 = sshll.u32 %s1770_s20, 4  ;;  %s271_s24 = int_to_ptr.vmem [resolvable:$true] %s270_s24 }
  0x23   : > { %s1458_s12 = scalar_lea.vmem %s239_s18, 4096  ;;  %p1466_p7 = scmp.lt.s32.totalorder %s239_s18, %s239_s18 }
  0x24   : > { %p2259_p1 = pneg %p1922_p13  ;;  %p1459_p2 = scmp.ne.s32.totalorder %s239_s18, %s1458_s12 }
  0x25   : > { %p1467_p8 = scmp.lt.s32.totalorder %s1458_s12, %s1458_s12 }
  0x26   : > { %p1461_p3 = pnand %p1459_p2, %p2259_p1 }
  0x27   : > { %p1468_p9 = por %p1467_p8, %p1466_p7 }
  0x28   : > { %p1462_p5 = pneg %p1461_p3 }
  0x2a   : > { %p1469_p12 = pnand %p1468_p9, %p1462_p5 }
  0x2c   : > { %1472 = shalt.err (!%p1469_p12)
}
  0x2d   : > { %s2255_s17 = smov 128   ;;  %s2257_s15 = smov 8  }
  0x2e   : > { %s2293_s1 = sld [smem:[#allocation33_spill]]  ;;  %s1484_s6 = scalar_lea.vmem %s271_s24, 512 }
  0x2f   : > { %p1485_p2 = scmp.ne.s32.totalorder %s271_s24, %s1484_s6  ;;  %p1492_p5 = scmp.lt.s32.totalorder %s271_s24, %s271_s24 }
  0x30   : > { %p1493_p8 = scmp.lt.s32.totalorder %s1484_s6, %s1484_s6 }
  0x31   : > { %p1487_p3 = pnand %p1485_p2, %p2259_p1 }
  0x32   : > { %p1494_p9 = por %p1493_p8, %p1492_p5 }
  0x33   : > { %p1488_p7 = pneg %p1487_p3 }
  0x34   : > { %1292 = dma.hbm_to_vmem [thread:$0]  (!%p1922_p13), %s2293_s1, 4096, %s239_s18, [#allocation7], %s2255_s17, %s2255_s17, %s2257_s15  }
  0x35   : > { %p1495_p12 = pnand %p1494_p9, %p1488_p7 }
  0x37   : > { %1498 = shalt.err (!%p1495_p12)
}
  0x38   : > { %s2294_s4 = sld [smem:[#allocation34_spill]]  ;;  %s36_s6 = sadd.s32 1, %s1759_s8 }
  0x39   : > { %p37_p2 = scmp.ge.s32.totalorder %s36_s6, 2  ;;  %s43_s21 = sadd.s32 1, %s1763_s9 }
  0x3a   : > { %s52_s18 = sadd.s32 1, %s1747_s29  ;;  %p59_p3 = scmp.ne.s32.totalorder %s1747_s29, %s1743_s28 }
  0x3b   : > { %s2349_s6 = smov (%p37_p2, %s36_s6), 0  ;;  %s2351_s21 = smov (!%p37_p2, %s43_s21), %s1763_s9 }
  0x3c   : > { %2295 = sst [smem:[#allocation30_spill]] %s2349_s6  ;;  %s1960_s14 = ssub.s32 %s1759_s8, %s2349_s6 }
  0x3d   : > { %p2260_p7 = scmp.eq.s32.totalorder %s1767_s10, 0  ;;  %p45_p5 = scmp.ge.s32.totalorder %s2351_s21, 2 }
  0x3e   : > { %1298 = dma.hbm_to_vmem [thread:$0]  (!%p1922_p13), %s2294_s4, 512, %s271_s24, [#allocation11], %s2255_s17, %s2255_s17, %s2257_s15  }
  0x3f   : > { %p65_p8 = scmp.ne.s32.totalorder %s1743_s28, %s1739_s27  ;;  %p1967_p9 = por %p2260_p7, %p59_p3 }
  0x40   : > { %s2353_s21 = smov (%p45_p5, %s2351_s21), 0  ;;  %s202_s12 = sadd.s32 1, %s1723_s23 }
  0x41   : > { %2297 = sst [smem:[#allocation31_spill]] %s2353_s21  ;;  %p1976_p2 = por %p2273_p0, %p65_p8 }
  0x42   : > { %s47_s17 = ssub.s32 %s1763_s9, %s2353_s21  ;;  %p2274_p7 = scmp.lt.s32.totalorder %s1767_s10, 4 }
  0x43   : > { %s2298_s20 = scalar_select %p1976_p2, 1, 0 }
  0x44   : > { %s49_s15 = sor.u32 %s1960_s14, %s47_s17  ;;  %p200_p1 = scmp.eq.s32.totalorder %s47_s17, 0 }
  0x45   : > { %2299 = sst [smem:[#allocation32_spill]] %s2298_s20  ;;  %p50_p3 = scmp.eq.s32.totalorder %s49_s15, 0 }
  0x46   : > { %s1985_s27 = scalar_select %p200_p1, %s1723_s23, %s202_s12  }
  0x47   : > { %s1988_s1 = scalar_select %p50_p3, %s1747_s29, %s52_s18  }
  0x48   : > { %s297_s4 = sand.u32 1, %s1767_s10   ;;  %s299_s6 = sand.u32 1, %s1747_s29  }
  0x49   : > { %s1073_s7 = sshll.u32 %s299_s6, 8  ;;  %s1095_s30 = sshll.u32 %s1759_s8, 5 }
  0x4a   : > { %s1076_s22 = sshll.u32 %s1763_s9, 6  ;;  %s301_s28 = scalar_lea.vmem [#allocation3], %s1073_s7 }
  0x4b   : > { %s308_s13 = sadd.s32 %s1095_s30, %s1076_s22  ;;  %s311_s20 = sshll.u32 %s301_s28, 4  ;;  %s312_s20 = int_to_ptr.vmem [resolvable:$true] %s311_s20 }
  0x4c   : > { %s1077_s11 = sshll.u32 %s308_s13, 7  ;;  %p2002_p1 = pnand %p2274_p7, %p1967_p9 }
  0x4d   : > { %s310_s16 = scalar_lea.hbm %s2243_s0, %s1077_s11  ;;  %s1773_s18 = smov [#allocation9]  }
  0x4e   : > { %s254_s6 = sshll.u32 %s1773_s18, 4  ;;  %s2006_s12 = scalar_lea.sflag [#allocation4], %s297_s4  ;;  %s255_s6 = int_to_ptr.vmem [resolvable:$true] %s254_s6 }
  0x4f   : > { %p1501_p5 = pneg %p2002_p1  ;;  %s1512_s22 = scalar_lea.vmem %s312_s20, 4096 }
  0x50   : > { %p1513_p8 = scmp.ne.s32.totalorder %s312_s20, %s1512_s22  ;;  %s1774_s28 = smov [#allocation3]  }
  0x51   : > { %s1517_s30 = sshll.u32 %s1774_s28, 4  ;;  %s1518_s30 = int_to_ptr.vmem [resolvable:$false] %s1517_s30 }
  0x52   : > { %p1515_p3 = pnand %p1513_p8, %p1501_p5  ;;  %s1519_s7 = scalar_lea.vmem %s1518_s30, 8192 }
  0x53   : > { %p1520_p12 = scmp.lt.s32.totalorder %s312_s20, %s1518_s30  ;;  %p1521_p9 = scmp.lt.s32.totalorder %s1519_s7, %s1512_s22 }
  0x54   : > { %p1516_p0 = pneg %p1515_p3 }
  0x55   : > { %p1522_p7 = por %p1521_p9, %p1520_p12 }
  0x57   : > { %p1523_p10 = pnand %p1522_p7, %p1516_p0 }
  0x59   : > { %1526 = shalt.err (!%p1523_p10)
}
  0x5a   : > { %s1775_s11 = smov 256   ;;  %s1776_s4 = smov 16  }
  0x5b   : > { %1305 = dma.hbm_to_vmem [thread:$0]  (!%p2002_p1), %s310_s16, 4096, %s312_s20, %s2006_s12, %s1775_s11, %s1775_s11, %s1776_s4  }
  0x5c   : > { %s1777_s13 = smov [#allocation12]   ;;  %s1538_s24 = scalar_lea.vmem %s255_s6, 512 }
  0x5d   : > { %s283_s21 = sshll.u32 %s1777_s13, 4  ;;  %p1539_p5 = scmp.ne.s32.totalorder %s255_s6, %s1538_s24  ;;  %s284_s21 = int_to_ptr.vmem [resolvable:$true] %s283_s21 }
  0x5e   : > { %p2301_p8 = pneg %p1922_p13  ;;  %p1546_p0 = scmp.lt.s32.totalorder %s255_s6, %s255_s6 }
  0x5f   : > { %p1547_p10 = scmp.lt.s32.totalorder %s1538_s24, %s1538_s24 }
  0x60   : > { %p1541_p3 = pnand %p1539_p5, %p2301_p8 }
  0x61   : > { %p1548_p7 = por %p1547_p10, %p1546_p0 }
  0x62   : > { %p1542_p12 = pneg %p1541_p3 }
  0x64   : > { %p1549_p9 = pnand %p1548_p7, %p1542_p12 }
  0x66   : > { %1552 = shalt.err (!%p1549_p9)
}
  0x67   : > { %s2302_s17 = smov 8   ;;  %s2303_s15 = smov 128  }
  0x68   : > { %1295 = dma.hbm_to_vmem [thread:$0]  (!%p1922_p13), %s2246_s3, 512, %s255_s6, [#allocation7], %s2303_s15, %s2303_s15, %s2302_s17  }
  0x69   : > { %s1564_s18 = scalar_lea.vmem %s284_s21, 4096  ;;  %p2304_p5 = pmov %p2301_p8 }
  0x6a   : > { %p1565_p1 = scmp.ne.s32.totalorder %s284_s21, %s1564_s18  ;;  %p1572_p0 = scmp.lt.s32.totalorder %s284_s21, %s284_s21 }
  0x6b   : > { %p1573_p12 = scmp.lt.s32.totalorder %s1564_s18, %s1564_s18 }
  0x6c   : > { %p1567_p8 = pnand %p1565_p1, %p2304_p5 }
  0x6d   : > { %p1574_p10 = por %p1573_p12, %p1572_p0 }
  0x6e   : > { %p1568_p3 = pneg %p1567_p8 }
  0x70   : > { %p1575_p7 = pnand %p1574_p10, %p1568_p3 }
  0x72   : > { %1578 = shalt.err (!%p1575_p7)
}
  0x73   : > { %1301 = dma.hbm_to_vmem [thread:$0]  (!%p1922_p13), %s2248_s5, 4096, %s284_s21, [#allocation11], %s1775_s11, %s1775_s11, %s1776_s4  }
  0x74   : > { %s1079_s6 = sshll.u32 %s1759_s8, 7  ;;  %s101_s30 = sadd.s32 1, %s1735_s26 }
  0x75   : > { %p108_p9 = scmp.ne.s32.totalorder %s1735_s26, %s1731_s25  ;;  %p2305_p1 = scmp.eq.s32.totalorder %s1960_s14, 0 }
  0x76   : > { %p2306_p5 = scmp.eq.s32.totalorder %s1767_s10, 0  ;;  %s323_s7 = sand.u32 1, %s1735_s26  }
  0x77   : > { %s2043_s19 = scalar_select %p2305_p1, %s1735_s26, %s101_s30  }
  0x78   : > { %p110_p8 = por %p108_p9, %p2306_p5  ;;  %s1078_s13 = sshll.u32 %s323_s7, 5 }
  0x79   : > { %s333_s20 = scalar_lea.hbm %s2245_s2, %s1079_s6  ;;  %p2307_p3 = scmp.lt.s32.totalorder %s1767_s10, 4 }
  0x7a   : > { %s325_s4 = scalar_lea.vmem [#allocation8], %s1078_s13  ;;  %s1778_s22 = smov [#allocation8]  }
  0x7b   : > { %p2053_p0 = pnand %p2307_p3, %p110_p8  ;;  %s334_s21 = sshll.u32 %s325_s4, 4  ;;  %s335_s21 = int_to_ptr.vmem [resolvable:$true] %s334_s21 }
  0x7c   : > { %s1592_s14 = scalar_lea.vmem %s335_s21, 512  ;;  %s1597_s28 = sshll.u32 %s1778_s22, 4  ;;  %s1598_s28 = int_to_ptr.vmem [resolvable:$false] %s1597_s28 }
  0x7d   : > { %p1581_p13 = pneg %p2053_p0  ;;  %p1593_p12 = scmp.ne.s32.totalorder %s335_s21, %s1592_s14 }
  0x7e   : > { %s1599_s30 = scalar_lea.vmem %s1598_s28, 1024  ;;  %p1600_p9 = scmp.lt.s32.totalorder %s335_s21, %s1598_s28 }
  0x7f   : > { %p1595_p10 = pnand %p1593_p12, %p1581_p13  ;;  %p1601_p1 = scmp.lt.s32.totalorder %s1599_s30, %s1592_s14 }
  0x81   : > { %p1596_p7 = pneg %p1595_p10  ;;  %p1602_p5 = por %p1601_p1, %p1600_p9 }
  0x83   : > { %p1603_p8 = pnand %p1602_p5, %p1596_p7 }
  0x85   : > { %1606 = shalt.err (!%p1603_p8)
}
  0x86   : > { %1308 = dma.hbm_to_vmem [thread:$0]  (!%p2053_p0), %s333_s20, 512, %s335_s21, %s2006_s12, %s1775_s11, %s2303_s15, %s2302_s17  }
  0x87   : > { %346 = sbr.rel (%p1914_p11) target bundleno = 959 (0x3bf), region = 44  ;;  %s2310_s7 = sld [smem:[#allocation25_spill]] (!%p1914_p11) }
  0x88   : > { %s2311_s13 = sld [smem:[#allocation22_spill]] (!%p1914_p11) }
  0x8d   : > { %s348_s16 = sand.u32 1, %s2310_s7  }
  0x8e   : > { %s350_s4 = sand.u32 1, %s2311_s13   ;;  %s349_s14 = scalar_lea.sflag [#allocation4], %s348_s16 }
  0x8f   : > { %s1081_s22 = sshll.u32 %s350_s4, 8 }
  0x90   : > { %s2069_s28 = scalar_lea.vmem [#allocation3], %s1081_s22 }
  0x91   : > { %1690 = dma.done.wait (%p1976_p2), %s349_s14, 4096  }
  0x92   : > { %1692 = vsyncadd (%p1976_p2), %s349_s14, 4294963200  ;;  %p2313_p3 = scmp.eq.s32.totalorder %s2310_s7, 0 }
  0x94   : > { %1694 = dma.done.wait (%p2313_p3), [#allocation7], 4096   ;;  %p2314_p0 = pmov %p2313_p3 }
  0x95   : > { %s363_s11 = sand.u32 1, %s1731_s25  }
  0x96   : > { %1696 = vsyncadd (%p2314_p0), [#allocation7], 4294963200  ;;  %s1083_s17 = sshll.u32 %s363_s11, 5 }
  0x97   : > { %s2080_s15 = scalar_lea.vmem [#allocation8], %s1083_s17 }
  0x98   : > { %1698 = dma.done.wait (%p1898_p4), %s349_s14, 512  }
  0x99   : > { %1700 = vsyncadd (%p1898_p4), %s349_s14, 4294966784  ;;  %p2316_p11 = pmov %p2314_p0 }
  0x9a   : > { %p2317_p2 = pmov %p2314_p0 }
  0x9b   : > { %1702 = dma.done.wait (%p2316_p11), [#allocation7], 512  }
  0x9c   : > { %1704 = vsyncadd (%p2317_p2), [#allocation7], 4294966784  ;;  %p2318_p13 = pmov %p2314_p0 }
  0x9d   : > { %p2319_p12 = pmov %p2314_p0 }
  0x9e   : > { %1706 = dma.done.wait (%p2318_p13), [#allocation11], 4608  }
  0x9f   : > { %1708 = vsyncadd (%p2319_p12), [#allocation11], 4294962688  ;;  %s2320_s20 = sld [smem:[#allocation21_spill]] }
  0xa0   : > { %s2321_s6 = sld [smem:[#allocation23_spill]] }
  0xa5   : > { %s408_s18 = sand.u32 1, %s2320_s20  }
  0xa6   : > { %s1087_s21 = sshll.u32 %s408_s18, 6  ;;  %p1088_p4 = scmp.ne.s32.totalorder %s2321_s6, 0 }
  0xa7   : > { %s2097_s30 = scalar_lea.vmem [#allocation13], %s1087_s21 }
  0xa8   : > { %419 = sbr.rel (%p1088_p4) target bundleno = 176 (0xb0), region = 72 }
  0xad   : > { %v1779_v0 = vmov 0.0  }
  0xae   : > { %420 = vst [vmem:[#allocation2 + $0x10] sm:$0xff] %v1779_v0  ;;  %421 = vst [vmem:[#allocation2] sm:$0xff] %v1779_v0 }
  0xaf   : > { %422 = vst [vmem:[#allocation2 + $0x18] sm:$0xff] %v1779_v0  ;;  %423 = vst [vmem:[#allocation2 + $0x8] sm:$0xff] %v1779_v0 }
  0xb0 PF: > { %v487_v1 = vld [vmem:[#allocation6 + $0xf8] sm:$0xff]  ;;  %v486_v3 = vld [vmem:[#allocation6 + $0xf0] sm:$0xff]  ;;  %v485_v5 = vld [vmem:[#allocation6 + $0xe8] sm:$0xff]  ;;  %s2322_s7 = sld [smem:[#allocation23_spill]] }
  0xb1   : > { %v471_v2 = vld [vmem:[#allocation6 + $0x78] sm:$0xff]  ;;  %1097 = vmatprep.subr.mxu0 %v487_v1  ;;  %v470_v4 = vld [vmem:[#allocation6 + $0x70] sm:$0xff]  ;;  %v469_v6 = vld [vmem:[#allocation6 + $0x68] sm:$0xff] }
  0xb2   : > { %1098 = vmatpush3.msra.mxu0 %v471_v2  ;;  %v484_v7 = vld [vmem:[#allocation6 + $0xe0] sm:$0xff]  ;;  %v483_v9 = vld [vmem:[#allocation6 + $0xd8] sm:$0xff]  ;;  %v482_v11 = vld [vmem:[#allocation6 + $0xd0] sm:$0xff] }
  0xb3   : > { %1099 = vmatprep.subr.mxu0 %v486_v3  ;;  %v468_v8 = vld [vmem:[#allocation6 + $0x60] sm:$0xff]  ;;  %v467_v10 = vld [vmem:[#allocation6 + $0x58] sm:$0xff]  ;;  %v466_v12 = vld [vmem:[#allocation6 + $0x50] sm:$0xff] }
  0xb4   : > { %1100 = vmatpush3.msra.mxu0 %v470_v4  ;;  %v481_v13 = vld [vmem:[#allocation6 + $0xc8] sm:$0xff]  ;;  %v480_v16 = vld [vmem:[#allocation6 + $0xc0] sm:$0xff]  ;;  %v479_v18 = vld [vmem:[#allocation6 + $0xb8] sm:$0xff] }
  0xb5   : > { %1101 = vmatprep.subr.mxu0 %v485_v5  ;;  %v425_v14 = vld [vmem:[%s2069_s28 + $0x8] sm:$0xff]  ;;  %v464_v17 = vld [vmem:[#allocation6 + $0x40] sm:$0xff]  ;;  %v463_v19 = vld [vmem:[#allocation6 + $0x38] sm:$0xff] }
  0xb6   : > { %1102 = vmatpush3.msra.mxu0 %v469_v6  ;;  %v465_v15 = vld [vmem:[#allocation6 + $0x48] sm:$0xff]  ;;  %552 = vmatprep.mubr.f32.mxu0 %v425_v14  ;;  %v478_v20 = vld [vmem:[#allocation6 + $0xb0] sm:$0xff]  ;;  %v476_v24 = vld [vmem:[#allocation6 + $0xa0] sm:$0xff]  ;;  %p1089_p10 = scmp.ne.s32.totalorder %s2322_s7, 1 }
  0xb7   : > { %1103 = vmatprep.subr.mxu0 %v484_v7  ;;  %v462_v21 = vld [vmem:[#allocation6 + $0x30] sm:$0xff]  ;;  %v477_v22 = vld [vmem:[#allocation6 + $0xa8] sm:$0xff]  ;;  %v460_v25 = vld [vmem:[#allocation6 + $0x20] sm:$0xff] }
  0xb8   : > { %1104 = vmatpush3.msra.mxu0 %v468_v8  ;;  %v461_v23 = vld [vmem:[#allocation6 + $0x28] sm:$0xff]  ;;  %v475_v26 = vld [vmem:[#allocation6 + $0x98] sm:$0xff]  ;;  %v474_v28 = vld [vmem:[#allocation6 + $0x90] sm:$0xff] }
  0xb9   : > { %1105 = vmatprep.subr.mxu0 %v483_v9  ;;  %v459_v27 = vld [vmem:[#allocation6 + $0x18] sm:$0xff]  ;;  %v458_v29 = vld [vmem:[#allocation6 + $0x10] sm:$0xff]  ;;  %v473_v30 = vld [vmem:[#allocation6 + $0x88] sm:$0xff] }
  0xba   : > { %1106 = vmatpush3.msra.mxu0 %v467_v10  ;;  %v457_v31 = vld [vmem:[#allocation6 + $0x8] sm:$0xff]  ;;  %v472_v32 = vld [vmem:[#allocation6 + $0x80] sm:$0xff]  ;;  %v427_v35 = vld [vmem:[%s2069_s28 + $0x18] sm:$0xff] }
  0xbb   : > { %1107 = vmatprep.subr.mxu0 %v482_v11  ;;  %v456_v33 = vld [vmem:[#allocation6] sm:$0xff]  ;;  %v426_v36 = vld [vmem:[%s2069_s28 + $0x10] sm:$0xff]  ;;  %v429_v37 = vld [vmem:[%s2069_s28 + $0x28] sm:$0xff] }
  0xbc   : > { %1108 = vmatpush3.msra.mxu0 %v466_v12  ;;  %v424_v34 = vld [vmem:[%s2069_s28] sm:$0xff]  ;;  %v431_v39 = vld [vmem:[%s2069_s28 + $0x38] sm:$0xff]  ;;  %v430_v40 = vld [vmem:[%s2069_s28 + $0x30] sm:$0xff] }
  0xbd   : > { %1109 = vmatprep.subr.mxu0 %v481_v13  ;;  %v428_v38 = vld [vmem:[%s2069_s28 + $0x20] sm:$0xff]  ;;  %v433_v41 = vld [vmem:[%s2069_s28 + $0x48] sm:$0xff]  ;;  %v435_v43 = vld [vmem:[%s2069_s28 + $0x58] sm:$0xff] }
  0xbe   : > { %1110 = vmatpush3.msra.mxu0 %v465_v15  ;;  %v432_v42 = vld [vmem:[%s2069_s28 + $0x40] sm:$0xff]  ;;  %v434_v44 = vld [vmem:[%s2069_s28 + $0x50] sm:$0xff]  ;;  %v437_v45 = vld [vmem:[%s2069_s28 + $0x68] sm:$0xff] }
  0xbf   : > { %1111 = vmatprep.subr.mxu0 %v480_v16  ;;  %v436_v46 = vld [vmem:[%s2069_s28 + $0x60] sm:$0xff]  ;;  %v439_v47 = vld [vmem:[%s2069_s28 + $0x78] sm:$0xff]  ;;  %v438_v48 = vld [vmem:[%s2069_s28 + $0x70] sm:$0xff] }
  0xc0   : > { %1112 = vmatpush3.msra.mxu0 %v464_v17  ;;  %v441_v49 = vld [vmem:[%s2069_s28 + $0x88] sm:$0xff]  ;;  %v440_v50 = vld [vmem:[%s2069_s28 + $0x80] sm:$0xff]  ;;  %v443_v51 = vld [vmem:[%s2069_s28 + $0x98] sm:$0xff] }
  0xc1   : > { %1113 = vmatprep.subr.mxu0 %v479_v18  ;;  %v442_v52 = vld [vmem:[%s2069_s28 + $0x90] sm:$0xff]  ;;  %v445_v53 = vld [vmem:[%s2069_s28 + $0xa8] sm:$0xff]  ;;  %v444_v54 = vld [vmem:[%s2069_s28 + $0xa0] sm:$0xff] }
  0xc2   : > { %1114 = vmatpush3.msra.mxu0 %v463_v19  ;;  %v447_v55 = vld [vmem:[%s2069_s28 + $0xb8] sm:$0xff]  ;;  %v446_v56 = vld [vmem:[%s2069_s28 + $0xb0] sm:$0xff]  ;;  %v449_v57 = vld [vmem:[%s2069_s28 + $0xc8] sm:$0xff] }
  0xc3   : > { %1115 = vmatprep.subr.mxu0 %v478_v20  ;;  %v448_v58 = vld [vmem:[%s2069_s28 + $0xc0] sm:$0xff]  ;;  %v451_v59 = vld [vmem:[%s2069_s28 + $0xd8] sm:$0xff]  ;;  %v450_v60 = vld [vmem:[%s2069_s28 + $0xd0] sm:$0xff] }
  0xc4   : > { %1116 = vmatpush3.msra.mxu0 %v462_v21  ;;  %v453_v61 = vld [vmem:[%s2069_s28 + $0xe8] sm:$0xff]  ;;  %v452_v62 = vld [vmem:[%s2069_s28 + $0xe0] sm:$0xff]  ;;  %v455_v63 = vld [vmem:[%s2069_s28 + $0xf8] sm:$0xff] }
  0xc5   : > { %1117 = vmatprep.subr.mxu0 %v477_v22  ;;  %v454_v0 = vld [vmem:[%s2069_s28 + $0xf0] sm:$0xff]  ;;  %v637_v1 = vld [vmem:[%s2080_s15] sm:$0xff] }
  0xc6   : > { %1118 = vmatpush3.msra.mxu0 %v461_v23  ;;  %1229 = vmatprep.mubr.f32.mxu1 %v637_v1 }
  0xc7   : > { %1119 = vmatprep.subr.mxu0 %v476_v24 }
  0xc8   : > { %1120 = vmatpush3.msra.mxu0 %v460_v25 }
  0xc9   : > { %1121 = vmatprep.subr.mxu0 %v475_v26 }
  0xca   : > { %1122 = vmatpush3.msra.mxu0 %v459_v27 }
  0xcb   : > { %1123 = vmatprep.subr.mxu0 %v474_v28 }
  0xcc   : > { %1124 = vmatpush3.msra.mxu0 %v458_v29 }
  0xcd   : > { %1125 = vmatprep.subr.mxu0 %v473_v30 }
  0xce   : > { %1126 = vmatpush3.msra.mxu0 %v457_v31 }
  0xcf   : > { %1127 = vmatprep.subr.mxu0 %v472_v32 }
  0xd0   : > { %1128 = vmatpush3.msra.mxu0 %v456_v33 }
  0xd1   : > { %553 = vmatmul.mubr.f32.vlgmr.msra.gmra.mxu0 %v424_v34 }
  0xd2   : > { %557 = vmatprep.mubr.f32.mxu0 %v427_v35 }
  0xd5   : > { %558 = vmatmul.mubr.f32.gmra.mxu0 %v426_v36 }
  0xd6   : > { %562 = vmatprep.mubr.f32.mxu0 %v429_v37 }
  0xd9   : > { %563 = vmatmul.mubr.f32.gmra.mxu0 %v428_v38 }
  0xda   : > { %567 = vmatprep.mubr.f32.mxu0 %v431_v39 }
  0xdd   : > { %568 = vmatmul.mubr.f32.gmra.mxu0 %v430_v40 }
  0xde   : > { %572 = vmatprep.mubr.f32.mxu0 %v433_v41 }
  0xe1   : > { %573 = vmatmul.mubr.f32.gmra.mxu0 %v432_v42 }
  0xe2   : > { %577 = vmatprep.mubr.f32.mxu0 %v435_v43 }
  0xe5   : > { %578 = vmatmul.mubr.f32.gmra.mxu0 %v434_v44 }
  0xe6   : > { %582 = vmatprep.mubr.f32.mxu0 %v437_v45 }
  0xe9   : > { %583 = vmatmul.mubr.f32.gmra.mxu0 %v436_v46 }
  0xea   : > { %587 = vmatprep.mubr.f32.mxu0 %v439_v47 }
  0xed   : > { %588 = vmatmul.mubr.f32.gmra.mxu0 %v438_v48 }
  0xee   : > { %592 = vmatprep.mubr.f32.mxu0 %v441_v49 }
  0xf1   : > { %593 = vmatmul.mubr.f32.gmra.mxu0 %v440_v50  ;;  %v638_v50 = vld [vmem:[%s2080_s15 + $0x8] sm:$0xff] }
  0xf2   : > { %597 = vmatprep.mubr.f32.mxu0 %v443_v51  ;;  %v639_v51 = vld [vmem:[%s2080_s15 + $0x10] sm:$0xff] }
  0xf5   : > { %598 = vmatmul.mubr.f32.gmra.mxu0 %v442_v52  ;;  %v640_v52 = vld [vmem:[%s2080_s15 + $0x18] sm:$0xff] }
  0xf6   : > { %602 = vmatprep.mubr.f32.mxu0 %v445_v53  ;;  %v634_v53 = vld [vmem:[#allocation2] sm:$0xff] }
  0xf9   : > { %603 = vmatmul.mubr.f32.gmra.mxu0 %v444_v54 }
  0xfa   : > { %607 = vmatprep.mubr.f32.mxu0 %v447_v55  ;;  %v633_v55 = vld [vmem:[#allocation2 + $0x10] sm:$0xff] }
  0xfd   : > { %608 = vmatmul.mubr.f32.gmra.mxu0 %v446_v56 }
  0xfe   : > { %612 = vmatprep.mubr.f32.mxu0 %v449_v57 }
 0x101   : > { %613 = vmatmul.mubr.f32.gmra.mxu0 %v448_v58  ;;  %v636_v58 = vld [vmem:[#allocation2 + $0x8] sm:$0xff] }
 0x102   : > { %617 = vmatprep.mubr.f32.mxu0 %v451_v59 }
 0x105   : > { %618 = vmatmul.mubr.f32.gmra.mxu0 %v450_v60 }
 0x106   : > { %622 = vmatprep.mubr.f32.mxu0 %v453_v61  ;;  %v635_v61 = vld [vmem:[#allocation2 + $0x18] sm:$0xff] }
 0x109   : > { %623 = vmatmul.mubr.f32.gmra.mxu0 %v452_v62 }
 0x10a   : > { %627 = vmatprep.mubr.f32.mxu0 %v455_v63 }
 0x10d   : > { %628 = vmatmul.mubr.f32.gmra.mxu0 %v454_v0 }
 0x191   : > { %v1129_v2 = vpop.f32.mrf.mxu0 }
 0x193   : > { %v1130_v3 = vpop.f32.mrf.mxu0 }
 0x194   : > { %v2133_v4 = vadd.f32 %v1130_v3, %v1129_v2 }
 0x195   : > { %v1132_v5 = vpop.f32.mrf.mxu0 }
 0x197   : > { %v1133_v6 = vpop.f32.mrf.mxu0 }
 0x198   : > { %v2135_v7 = vadd.f32 %v1133_v6, %v1132_v5 }
 0x199   : > { %v1135_v8 = vpop.f32.mrf.mxu0 }
 0x19b   : > { %v1136_v9 = vpop.f32.mrf.mxu0 }
 0x19c   : > { %v2137_v10 = vadd.f32 %v1136_v9, %v1135_v8 }
 0x19d   : > { %v1138_v11 = vpop.f32.mrf.mxu0 }
 0x19f   : > { %v1139_v12 = vpop.f32.mrf.mxu0 }
 0x1a0   : > { %v1140_v13 = vadd.f32 %v1139_v12, %v1138_v11 }
 0x1a1   : > { %v1141_v14 = vpop.f32.mrf.mxu0 }
 0x1a3   : > { %v1142_v15 = vpop.f32.mrf.mxu0 }
 0x1a4   : > { %v1143_v16 = vadd.f32 %v1142_v15, %v1141_v14 }
 0x1a5   : > { %v1144_v17 = vpop.f32.mrf.mxu0 }
 0x1a7   : > { %v1145_v18 = vpop.f32.mrf.mxu0 }
 0x1a8   : > { %v1146_v49 = vadd.f32 %v1145_v18, %v1144_v17 }
 0x1a9   : > { %v1147_v19 = vpop.f32.mrf.mxu0 }
 0x1ab   : > { %v1148_v20 = vpop.f32.mrf.mxu0 }
 0x1ac   : > { %v1149_v48 = vadd.f32 %v1148_v20, %v1147_v19 }
 0x1ad   : > { %v1150_v21 = vpop.f32.mrf.mxu0 }
 0x1af   : > { %v1151_v22 = vpop.f32.mrf.mxu0 }
 0x1b0   : > { %v1152_v47 = vadd.f32 %v1151_v22, %v1150_v21 }
 0x1b1   : > { %v1153_v23 = vpop.f32.mrf.mxu0 }
 0x1b3   : > { %v1154_v24 = vpop.f32.mrf.mxu0 }
 0x1b4   : > { %v1155_v46 = vadd.f32 %v1154_v24, %v1153_v23 }
 0x1b5   : > { %v1156_v25 = vpop.f32.mrf.mxu0 }
 0x1b7   : > { %v1157_v26 = vpop.f32.mrf.mxu0 }
 0x1b8   : > { %v1158_v45 = vadd.f32 %v1157_v26, %v1156_v25 }
 0x1b9   : > { %v1159_v27 = vpop.f32.mrf.mxu0 }
 0x1bb   : > { %v1160_v28 = vpop.f32.mrf.mxu0 }
 0x1bc   : > { %v1161_v44 = vadd.f32 %v1160_v28, %v1159_v27 }
 0x1bd   : > { %v1162_v29 = vpop.f32.mrf.mxu0 }
 0x1bf   : > { %v1163_v30 = vpop.f32.mrf.mxu0 }
 0x1c0   : > { %v1164_v43 = vadd.f32 %v1163_v30, %v1162_v29 }
 0x1c1   : > { %v1165_v31 = vpop.f32.mrf.mxu0 }
 0x1c3   : > { %v1166_v32 = vpop.f32.mrf.mxu0 }
 0x1c4   : > { %v1167_v42 = vadd.f32 %v1166_v32, %v1165_v31 }
 0x1c5   : > { %v1168_v33 = vpop.f32.mrf.mxu0 }
 0x1c7   : > { %v1169_v34 = vpop.f32.mrf.mxu0 }
 0x1c8   : > { %v1170_v41 = vadd.f32 %v1169_v34, %v1168_v33 }
 0x1c9   : > { %v1171_v35 = vpop.f32.mrf.mxu0 }
 0x1cb   : > { %v1172_v36 = vpop.f32.mrf.mxu0 }
 0x1cc   : > { %v1173_v40 = vadd.f32 %v1172_v36, %v1171_v35 }
 0x1cd   : > { %v1174_v37 = vpop.f32.mrf.mxu0 }
 0x1cf   : > { %v1175_v38 = vpop.f32.mrf.mxu0 }
 0x1d0   : > { %v1176_v39 = vadd.f32 %v1175_v38, %v1174_v37 }
 0x1d2   : > { %1197 = vmatprep.subr.mxu1 %v1176_v39 }
 0x1d3   : > { %1198 = vmatpush3.msra.mxu1 %v1176_v39 }
 0x1d4   : > { %1199 = vmatprep.subr.mxu1 %v1173_v40 }
 0x1d5   : > { %1200 = vmatpush3.msra.mxu1 %v1173_v40 }
 0x1d6   : > { %1201 = vmatprep.subr.mxu1 %v1170_v41 }
 0x1d7   : > { %1202 = vmatpush3.msra.mxu1 %v1170_v41 }
 0x1d8   : > { %1203 = vmatprep.subr.mxu1 %v1167_v42 }
 0x1d9   : > { %1204 = vmatpush3.msra.mxu1 %v1167_v42 }
 0x1da   : > { %1205 = vmatprep.subr.mxu1 %v1164_v43 }
 0x1db   : > { %1206 = vmatpush3.msra.mxu1 %v1164_v43 }
 0x1dc   : > { %1207 = vmatprep.subr.mxu1 %v1161_v44 }
 0x1dd   : > { %1208 = vmatpush3.msra.mxu1 %v1161_v44 }
 0x1de   : > { %1209 = vmatprep.subr.mxu1 %v1158_v45 }
 0x1df   : > { %1210 = vmatpush3.msra.mxu1 %v1158_v45 }
 0x1e0   : > { %1211 = vmatprep.subr.mxu1 %v1155_v46 }
 0x1e1   : > { %1212 = vmatpush3.msra.mxu1 %v1155_v46 }
 0x1e2   : > { %1213 = vmatprep.subr.mxu1 %v1152_v47 }
 0x1e3   : > { %1214 = vmatpush3.msra.mxu1 %v1152_v47 }
 0x1e4   : > { %1215 = vmatprep.subr.mxu1 %v1149_v48 }
 0x1e5   : > { %1216 = vmatpush3.msra.mxu1 %v1149_v48 }
 0x1e6   : > { %1217 = vmatprep.subr.mxu1 %v1146_v49 }
 0x1e7   : > { %1218 = vmatpush3.msra.mxu1 %v1146_v49 }
 0x1e8   : > { %1219 = vmatprep.subr.mxu1 %v1143_v16 }
 0x1e9   : > { %1220 = vmatpush3.msra.mxu1 %v1143_v16 }
 0x1ea   : > { %1221 = vmatprep.subr.mxu1 %v1140_v13 }
 0x1eb   : > { %1222 = vmatpush3.msra.mxu1 %v1140_v13 }
 0x1ec   : > { %1223 = vmatprep.subr.mxu1 %v2137_v10 }
 0x1ed   : > { %1224 = vmatpush3.msra.mxu1 %v2137_v10 }
 0x1ee   : > { %1225 = vmatprep.subr.mxu1 %v2135_v7 }
 0x1ef   : > { %1226 = vmatpush3.msra.mxu1 %v2135_v7 }
 0x1f0   : > { %1227 = vmatprep.subr.mxu1 %v2133_v4 }
 0x1f1   : > { %1228 = vmatpush3.msra.mxu1 %v2133_v4 }
 0x1f2   : > { %1230 = vmatmul.mubr.f32.vlgmr.msra.gmra.mxu1 %v638_v50 }
 0x1f3   : > { %1232 = vmatprep.mubr.f32.mxu1 %v639_v51 }
 0x1f6   : > { %1233 = vmatmul.mubr.f32.gmra.mxu1 %v640_v52 }
 0x2b2   : > { %v1231_v54 = vpop.f32.mrf.mxu1 }
 0x2b3   : > { %v727_v56 = vadd.f32 %v1231_v54, %v634_v53 }
 0x2b4   : > { %v707_v57 = vpop.f32.mrf.mxu1 }
 0x2b5   : > { %731 = vst [vmem:[#allocation2] sm:$0xff] %v727_v56  ;;  %v726_v59 = vadd.f32 %v707_v57, %v633_v55 }
 0x2b6   : > { %v1234_v60 = vpop.f32.mrf.mxu1 }
 0x2b7   : > { %730 = vst [vmem:[#allocation2 + $0x10] sm:$0xff] %v726_v59  ;;  %v729_v62 = vadd.f32 %v1234_v60, %v636_v58  ;;  %737 = sbr.rel (%p1089_p10) target bundleno = 934 (0x3a6), region = 76 }
 0x2b8   : > { %v717_v63 = vpop.f32.mrf.mxu1 }
 0x2b9   : > { %733 = vst [vmem:[#allocation2 + $0x8] sm:$0xff] %v729_v62  ;;  %v728_v0 = vadd.f32 %v717_v63, %v635_v61 }
 0x2bb   : > { %732 = vst [vmem:[#allocation2 + $0x18] sm:$0xff] %v728_v0 }
 0x2bc   : > { %v793_v1 = vld [vmem:[#allocation12 + $0xf8] sm:$0xff]  ;;  %v792_v2 = vld [vmem:[#allocation12 + $0xf0] sm:$0xff]  ;;  %v791_v3 = vld [vmem:[#allocation12 + $0xe8] sm:$0xff]  ;;  %v1780_v55 = vmov 0.0  }
 0x2bd   : > { %794 = vmatprep.subr.mxu0 %v793_v1  ;;  %1235 = vmatprep.subr.mxu1 %v793_v1  ;;  %v790_v4 = vld [vmem:[#allocation12 + $0xe0] sm:$0xff]  ;;  %v789_v5 = vld [vmem:[#allocation12 + $0xd8] sm:$0xff]  ;;  %v788_v6 = vld [vmem:[#allocation12 + $0xd0] sm:$0xff] }
 0x2be   : > { %795 = vmatpush1.msra.mxu0 %v792_v2  ;;  %1251 = vmatpush1.msra.mxu1 %v792_v2  ;;  %v787_v7 = vld [vmem:[#allocation12 + $0xc8] sm:$0xff]  ;;  %v786_v8 = vld [vmem:[#allocation12 + $0xc0] sm:$0xff]  ;;  %v785_v9 = vld [vmem:[#allocation12 + $0xb8] sm:$0xff] }
 0x2bf   : > { %796 = vmatprep.subr.mxu0 %v791_v3  ;;  %1236 = vmatprep.subr.mxu1 %v791_v3  ;;  %v784_v10 = vld [vmem:[#allocation12 + $0xb0] sm:$0xff]  ;;  %v783_v11 = vld [vmem:[#allocation12 + $0xa8] sm:$0xff]  ;;  %v782_v12 = vld [vmem:[#allocation12 + $0xa0] sm:$0xff] }
 0x2c0   : > { %797 = vmatpush1.msra.mxu0 %v790_v4  ;;  %1252 = vmatpush1.msra.mxu1 %v790_v4  ;;  %v781_v13 = vld [vmem:[#allocation12 + $0x98] sm:$0xff]  ;;  %v780_v14 = vld [vmem:[#allocation12 + $0x90] sm:$0xff]  ;;  %v779_v15 = vld [vmem:[#allocation12 + $0x88] sm:$0xff] }
 0x2c1   : > { %798 = vmatprep.subr.mxu0 %v789_v5  ;;  %1237 = vmatprep.subr.mxu1 %v789_v5  ;;  %v778_v16 = vld [vmem:[#allocation12 + $0x80] sm:$0xff]  ;;  %v777_v17 = vld [vmem:[#allocation12 + $0x78] sm:$0xff]  ;;  %v776_v18 = vld [vmem:[#allocation12 + $0x70] sm:$0xff] }
 0x2c2   : > { %799 = vmatpush1.msra.mxu0 %v788_v6  ;;  %1253 = vmatpush1.msra.mxu1 %v788_v6  ;;  %v775_v19 = vld [vmem:[#allocation12 + $0x68] sm:$0xff]  ;;  %v774_v20 = vld [vmem:[#allocation12 + $0x60] sm:$0xff]  ;;  %v773_v21 = vld [vmem:[#allocation12 + $0x58] sm:$0xff] }
 0x2c3   : > { %800 = vmatprep.subr.mxu0 %v787_v7  ;;  %1238 = vmatprep.subr.mxu1 %v787_v7  ;;  %v738_v22 = vld [vmem:[#allocation2 + $0x10] sm:$0xff]  ;;  %v742_v23 = vld [vmem:[#allocation10] sm:$0xff]  ;;  %v740_v25 = vld [vmem:[#allocation2 + $0x18] sm:$0xff] }
 0x2c4   : > { %801 = vmatpush1.msra.mxu0 %v786_v8  ;;  %1254 = vmatpush1.msra.mxu1 %v786_v8  ;;  %v772_v24 = vld [vmem:[#allocation12 + $0x50] sm:$0xff]  ;;  %v771_v27 = vld [vmem:[#allocation12 + $0x48] sm:$0xff]  ;;  %v770_v28 = vld [vmem:[#allocation12 + $0x40] sm:$0xff]  ;;  %v746_v31 = vmul.f32 %v742_v23, %v738_v22 }
 0x2c5   : > { %802 = vmatprep.subr.mxu0 %v785_v9  ;;  %1239 = vmatprep.subr.mxu1 %v785_v9  ;;  %v744_v26 = vld [vmem:[#allocation10 + $0x10] sm:$0xff]  ;;  %v769_v29 = vld [vmem:[#allocation12 + $0x38] sm:$0xff]  ;;  %v750_v32 = vld [vmem:[#allocation9] sm:$0xff] }
 0x2c6   : > { %803 = vmatpush1.msra.mxu0 %v784_v10  ;;  %1255 = vmatpush1.msra.mxu1 %v784_v10  ;;  %v768_v30 = vld [vmem:[#allocation12 + $0x30] sm:$0xff]  ;;  %v748_v33 = vmul.f32 %v744_v26, %v740_v25  ;;  %v739_v35 = vld [vmem:[#allocation2] sm:$0xff]  ;;  %v743_v36 = vld [vmem:[#allocation10 + $0x8] sm:$0xff]  ;;  %v754_v41 = vadd.f32 %v750_v32, %v746_v31 }
 0x2c7   : > { %804 = vmatprep.subr.mxu0 %v783_v11  ;;  %1240 = vmatprep.subr.mxu1 %v783_v11  ;;  %v752_v34 = vld [vmem:[#allocation9 + $0x10] sm:$0xff]  ;;  %v741_v37 = vld [vmem:[#allocation2 + $0x8] sm:$0xff]  ;;  %v745_v38 = vld [vmem:[#allocation10 + $0x18] sm:$0xff]  ;;  %v747_v44 = vmul.f32 %v743_v36, %v739_v35 }
 0x2c8   : > { %805 = vmatpush1.msra.mxu0 %v782_v12  ;;  %1256 = vmatpush1.msra.mxu1 %v782_v12  ;;  %v767_v39 = vld [vmem:[#allocation12 + $0x28] sm:$0xff]  ;;  %v766_v40 = vld [vmem:[#allocation12 + $0x20] sm:$0xff]  ;;  %v765_v42 = vld [vmem:[#allocation12 + $0x18] sm:$0xff]  ;;  %v756_v43 = vadd.f32 %v752_v34, %v748_v33  ;;  %v749_v45 = vmul.f32 %v745_v38, %v741_v37  ;;  %v758_v51 = vmax.f32 %v754_v41, 0.0 }
 0x2c9   : > { %806 = vmatprep.subr.mxu0 %v781_v13  ;;  %1241 = vmatprep.subr.mxu1 %v781_v13  ;;  %v764_v46 = vld [vmem:[#allocation12 + $0x10] sm:$0xff]  ;;  %v751_v47 = vld [vmem:[#allocation9 + $0x8] sm:$0xff]  ;;  %v753_v48 = vld [vmem:[#allocation9 + $0x18] sm:$0xff] }
 0x2ca   : > { %807 = vmatpush1.msra.mxu0 %v780_v14  ;;  %1257 = vmatpush1.msra.mxu1 %v780_v14  ;;  %v763_v49 = vld [vmem:[#allocation12 + $0x8] sm:$0xff]  ;;  %v762_v50 = vld [vmem:[#allocation12] sm:$0xff]  ;;  %v760_v52 = vmax.f32 %v756_v43, 0.0  ;;  %v755_v53 = vadd.f32 %v751_v47, %v747_v44  ;;  %v757_v54 = vadd.f32 %v753_v48, %v749_v45 }
 0x2cb   : > { %808 = vmatprep.subr.mxu0 %v779_v15  ;;  %1242 = vmatprep.subr.mxu1 %v779_v15 }
 0x2cc   : > { %809 = vmatpush1.msra.mxu0 %v778_v16  ;;  %1258 = vmatpush1.msra.mxu1 %v778_v16  ;;  %v759_v56 = vmax.f32 %v755_v53, 0.0  ;;  %v761_v57 = vmax.f32 %v757_v54, 0.0 }
 0x2cd   : > { %810 = vmatprep.subr.mxu0 %v777_v17  ;;  %1243 = vmatprep.subr.mxu1 %v777_v17 }
 0x2ce   : > { %811 = vmatpush1.msra.mxu0 %v776_v18  ;;  %1259 = vmatpush1.msra.mxu1 %v776_v18 }
 0x2cf   : > { %812 = vmatprep.subr.mxu0 %v775_v19  ;;  %1244 = vmatprep.subr.mxu1 %v775_v19 }
 0x2d0   : > { %813 = vmatpush1.msra.mxu0 %v774_v20  ;;  %1260 = vmatpush1.msra.mxu1 %v774_v20 }
 0x2d1   : > { %814 = vmatprep.subr.mxu0 %v773_v21  ;;  %1245 = vmatprep.subr.mxu1 %v773_v21 }
 0x2d2   : > { %815 = vmatpush1.msra.mxu0 %v772_v24  ;;  %1261 = vmatpush1.msra.mxu1 %v772_v24 }
 0x2d3   : > { %816 = vmatprep.subr.mxu0 %v771_v27  ;;  %1246 = vmatprep.subr.mxu1 %v771_v27 }
 0x2d4   : > { %817 = vmatpush1.msra.mxu0 %v770_v28  ;;  %1262 = vmatpush1.msra.mxu1 %v770_v28 }
 0x2d5   : > { %818 = vmatprep.subr.mxu0 %v769_v29  ;;  %1247 = vmatprep.subr.mxu1 %v769_v29 }
 0x2d6   : > { %819 = vmatpush1.msra.mxu0 %v768_v30  ;;  %1263 = vmatpush1.msra.mxu1 %v768_v30 }
 0x2d7   : > { %820 = vmatprep.subr.mxu0 %v767_v39  ;;  %1248 = vmatprep.subr.mxu1 %v767_v39 }
 0x2d8   : > { %821 = vmatpush1.msra.mxu0 %v766_v40  ;;  %1264 = vmatpush1.msra.mxu1 %v766_v40 }
 0x2d9   : > { %822 = vmatprep.subr.mxu0 %v765_v42  ;;  %1249 = vmatprep.subr.mxu1 %v765_v42 }
 0x2da   : > { %823 = vmatpush1.msra.mxu0 %v764_v46  ;;  %1265 = vmatpush1.msra.mxu1 %v764_v46 }
 0x2db   : > { %824 = vmatprep.subr.mxu0 %v763_v49  ;;  %1250 = vmatprep.subr.mxu1 %v763_v49 }
 0x2dc   : > { %825 = vmatpush1.msra.mxu0 %v762_v50  ;;  %1266 = vmatpush1.msra.mxu1 %v762_v50 }
 0x2dd   : > { %858 = vmatprep.mubr.f32.mxu0 %v1780_v55  ;;  %870 = vmatprep.mubr.f32.mxu1 %v1780_v55 }
 0x2de   : > { %859 = vmatmul.mubr.f32.vlgmr.msra.gmra.mxu0 %v758_v51  ;;  %871 = vmatmul.mubr.f32.vlgmr.msra.gmra.mxu1 %v760_v52 }
 0x2df   : > { %864 = vmatprep.mubr.f32.mxu0 %v1780_v55  ;;  %876 = vmatprep.mubr.f32.mxu1 %v1780_v55 }
 0x2e2   : > { %865 = vmatmul.mubr.f32.gmra.mxu0 %v759_v56  ;;  %877 = vmatmul.mubr.f32.gmra.mxu1 %v761_v57 }
 0x39e   : > { %v860_v58 = vpop.f32.mrf.mxu0  ;;  %v872_v59 = vpop.f32.mrf.mxu1 }
 0x39f   : > { %883 = vst [vmem:[%s2097_s30] sm:$0xff] %v860_v58  ;;  %887 = vst [vmem:[%s2097_s30 + $0x20] sm:$0xff] %v872_v59 }
 0x3a0   : > { %v862_v60 = vpop.f32.mrf.mxu0  ;;  %v874_v61 = vpop.f32.mrf.mxu1 }
 0x3a1   : > { %884 = vst [vmem:[%s2097_s30 + $0x8] sm:$0xff] %v862_v60  ;;  %888 = vst [vmem:[%s2097_s30 + $0x28] sm:$0xff] %v874_v61 }
 0x3a2   : > { %v866_v62 = vpop.f32.mrf.mxu0  ;;  %v878_v63 = vpop.f32.mrf.mxu1 }
 0x3a3   : > { %885 = vst [vmem:[%s2097_s30 + $0x10] sm:$0xff] %v866_v62  ;;  %889 = vst [vmem:[%s2097_s30 + $0x30] sm:$0xff] %v878_v63 }
 0x3a4   : > { %v868_v0 = vpop.f32.mrf.mxu0  ;;  %v880_v1 = vpop.f32.mrf.mxu1 }
 0x3a5   : > { %886 = vst [vmem:[%s2097_s30 + $0x18] sm:$0xff] %v868_v0  ;;  %890 = vst [vmem:[%s2097_s30 + $0x38] sm:$0xff] %v880_v1 }
 0x3a6 PF: > { %s2323_s13 = sld [smem:[#allocation24_spill]]  ;;  %s908_s17 = sshll.u32 %s2097_s30, 4  ;;  %s2164_s17 = int_to_ptr.vmem [resolvable:$true] %s908_s17 }
 0x3a7   : > { %s2326_s28 = sld [smem:[#allocation35_spill]]  ;;  %s2168_s15 = scalar_lea.sflag [#allocation5], %s408_s18 }
 0x3a8   : > { %s1607_s20 = scalar_lea.vmem %s2164_s17, 1024  ;;  %s1781_s21 = smov [#allocation13]  }
 0x3a9   : > { %p1608_p7 = scmp.ne.s32.totalorder %s2164_s17, %s1607_s20  ;;  %s1611_s6 = sshll.u32 %s1781_s21, 4  ;;  %s1612_s6 = int_to_ptr.vmem [resolvable:$false] %s1611_s6 }
 0x3aa   : > { %s1613_s7 = scalar_lea.vmem %s1612_s6, 2048  ;;  %p1614_p5 = scmp.lt.s32.totalorder %s2164_s17, %s1612_s6 }
 0x3ab   : > { %p1609_p9 = pnand %p1608_p7, %p1904_p6  ;;  %p1615_p8 = scmp.lt.s32.totalorder %s1613_s7, %s1607_s20 }
 0x3ac   : > { %s1096_s4 = sshll.u32 %s2323_s13, 10 }
 0x3ad   : > { %s2327_s12 = smov %s2326_s28  ;;  %s2161_s11 = scalar_lea.hbm %s2326_s28, %s1096_s4 }
 0x3ae   : > { %p1610_p1 = pneg %p1609_p9  ;;  %p1616_p3 = por %p1615_p8, %p1614_p5 }
 0x3b0   : > { %p1617_p0 = pnand %p1616_p3, %p1610_p1 }
 0x3b2   : > { %1620 = shalt.err (!%p1617_p0)
}
 0x3b3   : > { %s1621_s18 = scalar_lea.hbm %s2161_s11, 1024  ;;  %s1625_s24 = scalar_lea.hbm %s2327_s12, 2048 }
 0x3b4   : > { %p1622_p11 = scmp.ne.s32.totalorder %s2161_s11, %s1621_s18  ;;  %p1626_p12 = scmp.lt.s32.totalorder %s2161_s11, %s2327_s12 }
 0x3b5   : > { %p1627_p4 = scmp.lt.s32.totalorder %s1625_s24, %s1621_s18 }
 0x3b6   : > { %p1623_p2 = pnand %p1622_p11, %p1904_p6 }
 0x3b7   : > { %p1628_p10 = por %p1627_p4, %p1626_p12 }
 0x3b8   : > { %p1624_p13 = pneg %p1623_p2 }
 0x3ba   : > { %p1629_p7 = pnand %p1628_p10, %p1624_p13 }
 0x3bc   : > { %1632 = shalt.err (!%p1629_p7)
}
 0x3bd   : > { %s1782_s14 = smov 256   ;;  %s1783_s28 = smov 16  }
 0x3be   : > { %1287 = dma.vmem_to_hbm [thread:$0]  (%p1904_p6), %s2164_s17, 1024, %s2161_s11, %s2168_s15, %s1782_s14, %s1782_s14, %s1783_s28  }
 0x3bf PF: > { %s2328_s20 = sld [smem:[#allocation20_spill]]  ;;  %p1322_p9 = scmp.ge.s32.totalorder %s1767_s10, 2 }
 0x3c0   : > { %s2329_s21 = sld [smem:[#allocation28_spill]] }
 0x3c5   : > { %s923_s6 = sand.u32 1, %s2328_s20  }
 0x3c6   : > { %p2330_p1 = scmp.ne.s32.totalorder %s2329_s21, 0  ;;  %s924_s7 = scalar_lea.sflag [#allocation5], %s923_s6 }
 0x3c8   : > { %p1310_p5 = pnand %p1322_p9, %p2330_p1 }
 0x3ca   : > { %p1311_p8 = pneg %p1310_p5 }
 0x3cc   : > { %1710 = dma.done.wait (%p1311_p8), %s924_s7, 1024  }
 0x3cd   : > { %1712 = vsyncadd (%p1311_p8), %s924_s7, 4294966272  ;;  %s24_s10 = sadd.s32 1, %s1767_s10   ;;  %s2332_s21 = sld [smem:[#allocation21_spill]] }
 0x3ce   : > { %p2196_p3 = scmp.ge.s32.totalorder %s24_s10, 6   ;;  %s2333_s16 = sld [smem:[#allocation22_spill]] }
 0x3cf   : > { %s2334_s11 = sld [smem:[#allocation30_spill]]  ;;  %s2336_s22 = smov %s1723_s23 }
 0x3d0   : > { %s2335_s17 = sld [smem:[#allocation31_spill]]  ;;  %s2337_s23 = smov %s1985_s27 }
 0x3d1   : > { %s2338_s24 = smov %s1731_s25  ;;  %s2339_s25 = smov %s1735_s26 }
 0x3d2   : > { %s2340_s26 = smov %s2043_s19  ;;  %s2342_s28 = smov %s1747_s29 }
 0x3d3   : > { %s2343_s29 = smov %s1988_s1  ;;  %s2344_s30 = smov %s1759_s8 }
 0x3d4   : > { %s2341_s27 = smov %s2333_s16  ;;  %s2345_s7 = smov %s1763_s9 }
 0x3d5   : > { %s2346_s8 = smov %s2334_s11  ;;  %23 = sbr.rel (!%p2196_p3) target bundleno = 16 (0x10), region = 126 }
 0x3d6   : > { %s2347_s9 = smov %s2335_s17 }
 0x3da   :  { %929 = vsyncpa [#allocation4], 1 }
 0x3db   :  { %931 = vsyncpa [#allocation4 + $0x1], 1 }
 0x3dc   :  { %932 = vsyncpa [#allocation7], 1 }
 0x3dd   :  { %933 = vsyncpa [#allocation11], 1 }
 0x3de   :  { %934 = vsyncpa [#allocation5], 1 }
 0x3df   :  { %936 = vsyncpa [#allocation5 + $0x1], 1 }

</bundles_post_ra>
